<compile_context>
chip_gen: v5e
topology: v5e:2x2
jax: 0.10.0
libtpu: 0.0.40
codegen_flags: <defaults>
</compile_context>

<pallas_src>
import functools

import jax
import jax.numpy as jnp
from jax.experimental import pallas as pl
from jax.experimental.pallas import tpu as pltpu


# ---------------------------------------------------------------------------
# Pallas kernel: full FNO (lifting -> n_layers spectral blocks -> projection)
# for one batch tile, channels-last (tokens in sublanes, channels in lanes).
# ---------------------------------------------------------------------------
def fno_kernel(v_ref, wl1, bl1, wl2, bl2, wsk, wblk, bsp, wp1, bp1, wp2, bp2,
               fstk, ginv, o_ref, *, n_layers):
    f32 = jnp.float32
    hi = jax.lax.Precision.HIGHEST
    fast = (wl1.dtype == jnp.bfloat16)          # bf16 operands, f32 accumulation

    def dot(a, b):
        if fast:
            return jnp.dot(a.astype(jnp.bfloat16), b.astype(jnp.bfloat16),
                           preferred_element_type=f32)
        return jnp.dot(a, b, preferred_element_type=f32, precision=hi)

    def mode_mix(x, w):
        # x: (Kp, bt, 2C), w: (Kp, 2C, 2C) -> (Kp, bt, 2C); batched-over-modes MXU matmul
        if fast:
            return jnp.einsum("kbe,ked->kbd", x.astype(jnp.bfloat16), w,
                              preferred_element_type=f32)
        return jnp.einsum("kbe,ked->kbd", x, w, preferred_element_type=f32, precision=hi)

    bt, L, Cin = v_ref.shape
    C = wl2.shape[1]
    Kp = fstk.shape[0] // 2                     # padded mode count

    v = v_ref[...].reshape(bt * L, Cin)         # fold batch tile into the row dim

    # ---- lifting ChannelMLP: 1x1 conv -> gelu -> 1x1 conv ----
    h = jax.nn.gelu(dot(v, wl1[...]) + bl1[...])
    h = dot(h, wl2[...]) + bl2[...]             # (bt*L, C), f32

    fstk_v = fstk[...]                          # (2Kp, L)  = [frT ; fiT]   (K zero-padded)
    ginv_v = ginv[...]                          # (L, 2Kp)  = [grT | -giT]

    for l in range(n_layers):
        # hoist per-layer weight slices (read once)
        wsk_l = wsk[l]                          # (C, C)
        wblk_l = wblk[l]                        # (Kp, 2C, 2C)
        bsp_l = bsp[l]                          # (1, C)

        # linear (1x1 conv, no bias) skip connection, token-wise on the full tile
        skip = dot(h, wsk_l)                    # (bt*L, C)

        # SpectralConv1d: fused truncated rDFT -> batched per-mode mix -> fused irDFT
        h3 = h.reshape(bt, L, C)
        xcats = []
        for b in range(bt):
            xstk = dot(fstk_v, h3[b])                                    # (2Kp, C) [xre; xim]
            xcats.append(jnp.concatenate([xstk[:Kp], xstk[Kp:]], axis=-1))  # (Kp, 2C)
        x_all = jnp.stack(xcats, axis=1)                                 # (Kp, bt, 2C)
        y_all = mode_mix(x_all, wblk_l)                                  # (Kp, bt, 2C)

        specs = []
        for b in range(bt):
            ycat = y_all[:, b, :]                                        # (Kp, 2C) [yre|yim]
            ystk = jnp.concatenate([ycat[:, :C], ycat[:, C:]], axis=0)   # (2Kp, C)
            specs.append(dot(ginv_v, ystk))                              # (L, C)
        spec = jnp.concatenate(specs, axis=0)                            # (bt*L, C)

        h = spec + bsp_l + skip
        if l < n_layers - 1:
            h = jax.nn.gelu(h)

    # ---- projection ChannelMLP: 1x1 conv -> gelu -> 1x1 conv ----
    p = jax.nn.gelu(dot(h, wp1[...]) + bp1[...])
    y = dot(p, wp2[...]) + bp2[...]             # (bt*L, Cin)
    o_ref[...] = y.reshape(bt, L, Cin)


PARAM_ORDER = ("wl1", "bl1", "wl2", "bl2", "wsk", "wblk", "bsp",
               "wp1", "bp1", "wp2", "bp2", "fstk", "ginv")


def fno_pallas(v, kernel_params, n_layers, *, batch_tile=None):
    """v: [B, L, 2*Nmodes] float32 (channels-last) -> [B, L, 2*Nmodes] float32."""
    B, L, Cin = v.shape
    bt = B if batch_tile is None else batch_tile
    assert B % bt == 0, "batch_tile must divide the batch"
    assert L % 8 == 0, "L must be a multiple of 8 for the free (bt,L,C)<->(bt*L,C) reshape"
    weights = list(kernel_params)

    def wspec(a):
        nd = a.ndim
        return pl.BlockSpec(a.shape, lambda i, _nd=nd: (0,) * _nd)

    in_specs = [pl.BlockSpec((bt, L, Cin), lambda i: (i, 0, 0))]
    in_specs += [wspec(w) for w in weights]
    out_spec = pl.BlockSpec((bt, L, Cin), lambda i: (i, 0, 0))

    # explicit VMEM budget: resident weights + double-buffered io blocks + slack
    wbytes = sum(int(w.size) * w.dtype.itemsize for w in weights)
    io_bytes = 2 * bt * L * Cin * 4
    vmem_limit = int(min(max(4 * (wbytes + io_bytes), 8 << 20), 64 << 20))

    return pl.pallas_call(
        functools.partial(fno_kernel, n_layers=n_layers),
        out_shape=jax.ShapeDtypeStruct((B, L, Cin), jnp.float32),
        grid=(B // bt,),
        in_specs=in_specs,
        out_specs=out_spec,
        compiler_params=pltpu.CompilerParams(
            dimension_semantics=("parallel",),
            vmem_limit_bytes=vmem_limit),
    )(v, *weights)


# ---------------------------------------------------------------------------
# Host-side packing: fuse DFT pairs, build block-real mode-mix weights,
# pad K to a multiple of 8, cast matmul operands to the compute dtype.
# ---------------------------------------------------------------------------
def pack_kernel_params(params, compute_dtype=jnp.bfloat16):
    frT, fiT, grT, giT = params["frT"], params["fiT"], params["grT"], params["giT"]
    K, L = frT.shape
    Kp = ((K + 7) // 8) * 8
    pad = Kp - K
    fstk = jnp.concatenate([jnp.pad(frT, ((0, pad), (0, 0))),
                            jnp.pad(fiT, ((0, pad), (0, 0)))], axis=0)       # (2Kp, L)
    ginv = jnp.concatenate([jnp.pad(grT, ((0, 0), (0, pad))),
                            jnp.pad(-giT, ((0, 0), (0, pad)))], axis=1)      # (L, 2Kp)

    # Wblk[k] = [[wr, wi], [-wi, wr]]  so that  [xre|xim] @ Wblk = [xre·wr - xim·wi | xre·wi + xim·wr]
    wr, wi = params["wr"], params["wi"]                                      # (nl, K, C, C)
    top = jnp.concatenate([wr, wi], axis=-1)                                 # (nl, K, C, 2C)
    bot = jnp.concatenate([-wi, wr], axis=-1)
    wblk = jnp.concatenate([top, bot], axis=-2)                              # (nl, K, 2C, 2C)
    wblk = jnp.pad(wblk, ((0, 0), (0, pad), (0, 0), (0, 0)))                 # (nl, Kp, 2C, 2C)

    cd = compute_dtype
    packed = dict(
        wl1=params["wl1"].astype(cd), bl1=params["bl1"],
        wl2=params["wl2"].astype(cd), bl2=params["bl2"],
        wsk=params["wsk"].astype(cd), wblk=wblk.astype(cd), bsp=params["bsp"],
        wp1=params["wp1"].astype(cd), bp1=params["bp1"],
        wp2=params["wp2"].astype(cd), bp2=params["bp2"],
        fstk=fstk.astype(cd), ginv=ginv.astype(cd),
    )
    return [packed[k] for k in PARAM_ORDER]


# ---------------------------------------------------------------------------
# EqFno wrapper (glue in plain JAX, matching the PyTorch forward)
# ---------------------------------------------------------------------------
def get_power(task_info, Nmodes):
    # pkufiber get_power: launch power (mW) per mode: 10**(P_dBm/10) / Nmodes
    return 10.0 ** (task_info[:, 0] / 10.0) / Nmodes


def eqfno_forward(x, task_info, kernel_params, *, M, Nmodes, n_layers, batch_tile=None):
    """x: [B, L, Nmodes] complex64, task_info: [B, 4] -> [B, L-M+1, Nmodes] complex64."""
    P = get_power(task_info, Nmodes)                                     # [B]
    sqrtP = jnp.sqrt(P)[:, None, None].astype(jnp.float32)
    u = x * sqrtP
    v = jnp.concatenate([jnp.real(u), jnp.imag(u)], axis=-1).astype(jnp.float32)
    y = fno_pallas(v, kernel_params, n_layers, batch_tile=batch_tile)    # [B, L, 2N]
    yc = (y[..., :Nmodes] + 1j * y[..., Nmodes:]).astype(jnp.complex64) / sqrtP
    out = x + yc
    return out[:, M // 2: -(M // 2), :]


# ---------------------------------------------------------------------------
# Deterministic synthetic parameter init (+ truncated real-DFT matrices)
# ---------------------------------------------------------------------------
def init_params(key, Nmodes, n_layers, fno_modes, C, Lc, Pc, L):
    K = fno_modes // 2 + 1                 # neuralop keeps n_modes//2 + 1 rfft modes
    Cin = 2 * Nmodes
    ks = jax.random.split(key, 12)

    def w(k, shape, scale):
        return (scale * jax.random.normal(k, shape)).astype(jnp.float32)

    params = dict(
        wl1=w(ks[0], (Cin, Lc), 1.0 / (Cin ** 0.5)),
        bl1=w(ks[1], (1, Lc), 0.1),
        wl2=w(ks[2], (Lc, C), 1.0 / (Lc ** 0.5)),
        bl2=w(ks[3], (1, C), 0.1),
        wsk=w(ks[4], (n_layers, C, C), 1.0 / (C ** 0.5)),
        wr=w(ks[5], (n_layers, K, C, C), 1.0 / C),
        wi=w(ks[6], (n_layers, K, C, C), 1.0 / C),
        bsp=w(ks[7], (n_layers, 1, C), 0.1),
        wp1=w(ks[8], (C, Pc), 1.0 / (C ** 0.5)),
        bp1=w(ks[9], (1, Pc), 0.1),
        wp2=w(ks[10], (Pc, Cin), 1.0 / (Pc ** 0.5)),
        bp2=w(ks[11], (1, Cin), 0.1),
    )

    # truncated real-DFT matrices (rfft convention: X_k = sum_n x_n e^{-i2πkn/L})
    n = jnp.arange(L, dtype=jnp.float32)
    kk = jnp.arange(K, dtype=jnp.float32)
    ang = 2.0 * jnp.pi * kk[:, None] * n[None, :] / L       # (K, L)
    params["frT"] = jnp.cos(ang)
    params["fiT"] = -jnp.sin(ang)
    c = jnp.where(kk == 0, 1.0, 2.0)
    if L % 2 == 0 and K - 1 == L // 2:
        c = c.at[-1].set(1.0)                               # Nyquist bin not doubled
    params["grT"] = (c[:, None] * jnp.cos(ang) / L).T       # (L, K)
    params["giT"] = (c[:, None] * jnp.sin(ang) / L).T       # (L, K)
    return params


# ---------------------------------------------------------------------------
# Pure-JAX FFT reference of the FNO (for correctness check of the kernel)
# ---------------------------------------------------------------------------
def fno_ref(v, params, n_layers):
    B, L, _ = v.shape
    K = params["frT"].shape[0]
    hi = jax.lax.Precision.HIGHEST
    h = jax.nn.gelu(jnp.matmul(v, params["wl1"], precision=hi) + params["bl1"])
    h = jnp.matmul(h, params["wl2"], precision=hi) + params["bl2"]
    for l in range(n_layers):
        skip = jnp.matmul(h, params["wsk"][l], precision=hi)
        X = jnp.fft.rfft(h, axis=1)[:, :K, :]
        W = params["wr"][l] + 1j * params["wi"][l]
        Y = jnp.einsum("bkc,kcd->bkd", X, W, precision=hi)
        full = jnp.zeros((B, L // 2 + 1, h.shape[-1]), dtype=Y.dtype).at[:, :K, :].set(Y)
        spec = jnp.fft.irfft(full, n=L, axis=1) + params["bsp"][l]
        h = spec + skip
        if l < n_layers - 1:
            h = jax.nn.gelu(h)
    p = jax.nn.gelu(jnp.matmul(h, params["wp1"], precision=hi) + params["bp1"])
    return jnp.matmul(p, params["wp2"], precision=hi) + params["bp2"]


if __name__ == "__main__":
    # small shapes consistent with EqFno's forward (M must be odd, L > M-1)
    B, L = 2, 32
    Nmodes, M = 2, 9
    n_layers, fno_modes = 2, 8
    C, Lc, Pc = 16, 32, 32            # fno_channels, lifting_channels, projection_channels

    key = jax.random.PRNGKey(0)
    kx, ky, kp = jax.random.split(key, 3)
    xr = jax.random.normal(kx, (B, L, Nmodes), dtype=jnp.float32)
    xi = jax.random.normal(ky, (B, L, Nmodes), dtype=jnp.float32)
    x = (xr + 1j * xi).astype(jnp.complex64)                       # [B, L, Nmodes]
    task_info = jnp.array([[0.0, 0.0, 40.0, 2.0],
                           [2.0, 0.0, 80.0, 2.0]], dtype=jnp.float32)  # [B, 4]

    params = init_params(kp, Nmodes, n_layers, fno_modes, C, Lc, Pc, L)
    kparams_fast = pack_kernel_params(params, jnp.bfloat16)   # fast path (single-pass MXU)
    kparams_f32 = pack_kernel_params(params, jnp.float32)     # precise path (HIGHEST)

    # end-to-end EqFno forward on the fast path
    out = eqfno_forward(x, task_info, kparams_fast, M=M, Nmodes=Nmodes, n_layers=n_layers)
    out = jax.block_until_ready(out)
    assert out.shape == (B, L - M + 1, Nmodes), out.shape
    assert out.dtype == jnp.complex64, out.dtype

    # cross-check the Pallas FNO against a pure-JAX FFT reference
    P = get_power(task_info, Nmodes)
    sqrtP = jnp.sqrt(P)[:, None, None].astype(jnp.float32)
    u = x * sqrtP
    v = jnp.concatenate([jnp.real(u), jnp.imag(u)], axis=-1).astype(jnp.float32)
    y_ref = fno_ref(v, params, n_layers)

    y_f32 = jax.block_until_ready(fno_pallas(v, kparams_f32, n_layers))
    err_f32 = float(jnp.max(jnp.abs(y_f32 - y_ref)))
    assert err_f32 < 2e-3, f"f32 path max abs err {err_f32}"

    y_bf16 = jax.block_until_ready(fno_pallas(v, kparams_fast, n_layers))
    err_bf16 = float(jnp.max(jnp.abs(y_bf16 - y_ref)))
    assert err_bf16 < 1e-1, f"bf16 path max abs err {err_bf16}"   # loose: bf16 MXU operands

    print("KERNEL_OK")
</pallas_src>

<mosaic_0001>
module attributes {stable_mosaic.version = 11 : i64} {
  func.func @fno_kernel(%arg0: i32, %arg1: memref<2x32x4xf32, #tpu.memory_space<vmem>>, %arg2: memref<4x32xbf16, #tpu.memory_space<vmem>>, %arg3: memref<1x32xf32, #tpu.memory_space<vmem>>, %arg4: memref<32x16xbf16, #tpu.memory_space<vmem>>, %arg5: memref<1x16xf32, #tpu.memory_space<vmem>>, %arg6: memref<2x16x16xbf16, #tpu.memory_space<vmem>>, %arg7: memref<2x8x32x32xbf16, #tpu.memory_space<vmem>>, %arg8: memref<2x1x16xf32, #tpu.memory_space<vmem>>, %arg9: memref<16x32xbf16, #tpu.memory_space<vmem>>, %arg10: memref<1x32xf32, #tpu.memory_space<vmem>>, %arg11: memref<32x4xbf16, #tpu.memory_space<vmem>>, %arg12: memref<1x4xf32, #tpu.memory_space<vmem>>, %arg13: memref<16x32xbf16, #tpu.memory_space<vmem>>, %arg14: memref<32x16xbf16, #tpu.memory_space<vmem>>, %arg15: memref<2x32x4xf32, #tpu.memory_space<vmem>>) attributes {dimension_semantics = [#tpu.dimension_semantics<parallel>], iteration_bounds = array<i64: 1>, scalar_prefetch = 0 : i64, scratch_operands = 0 : i64, tpu.core_type = #tpu.core_type<tc>, window_params = [{transform_indices = @transform_0, window_bounds = array<i64: 2, 32, 4>}, {pipeline_mode = #tpu.pipeline_mode<synchronous>, transform_indices = @transform_1, window_bounds = array<i64: 4, 32>}, {pipeline_mode = #tpu.pipeline_mode<synchronous>, transform_indices = @transform_2, window_bounds = array<i64: 1, 32>}, {pipeline_mode = #tpu.pipeline_mode<synchronous>, transform_indices = @transform_3, window_bounds = array<i64: 32, 16>}, {pipeline_mode = #tpu.pipeline_mode<synchronous>, transform_indices = @transform_4, window_bounds = array<i64: 1, 16>}, {pipeline_mode = #tpu.pipeline_mode<synchronous>, transform_indices = @transform_5, window_bounds = array<i64: 2, 16, 16>}, {pipeline_mode = #tpu.pipeline_mode<synchronous>, transform_indices = @transform_6, window_bounds = array<i64: 2, 8, 32, 32>}, {pipeline_mode = #tpu.pipeline_mode<synchronous>, transform_indices = @transform_7, window_bounds = array<i64: 2, 1, 16>}, {pipeline_mode = #tpu.pipeline_mode<synchronous>, transform_indices = @transform_8, window_bounds = array<i64: 16, 32>}, {pipeline_mode = #tpu.pipeline_mode<synchronous>, transform_indices = @transform_9, window_bounds = array<i64: 1, 32>}, {pipeline_mode = #tpu.pipeline_mode<synchronous>, transform_indices = @transform_10, window_bounds = array<i64: 32, 4>}, {pipeline_mode = #tpu.pipeline_mode<synchronous>, transform_indices = @transform_11, window_bounds = array<i64: 1, 4>}, {pipeline_mode = #tpu.pipeline_mode<synchronous>, transform_indices = @transform_12, window_bounds = array<i64: 16, 32>}, {pipeline_mode = #tpu.pipeline_mode<synchronous>, transform_indices = @transform_13, window_bounds = array<i64: 32, 16>}, {transform_indices = @transform_14, window_bounds = array<i64: 2, 32, 4>}]} {
    %c0 = arith.constant 0 : index
    %c0_0 = arith.constant 0 : index
    %c0_1 = arith.constant 0 : index
    %0 = vector.load %arg1[%c0, %c0_0, %c0_1] : memref<2x32x4xf32, #tpu.memory_space<vmem>>, vector<2x32x4xf32>
    %1 = vector.shape_cast %0 : vector<2x32x4xf32> to vector<64x4xf32>
    %c0_2 = arith.constant 0 : index
    %c0_3 = arith.constant 0 : index
    %2 = vector.load %arg2[%c0_2, %c0_3] : memref<4x32xbf16, #tpu.memory_space<vmem>>, vector<4x32xbf16>
    %3 = arith.truncf %1 : vector<64x4xf32> to vector<64x4xbf16>
    %cst = arith.constant dense<0.000000e+00> : vector<64x32xf32>
    %4 = tpu.matmul %3, %2, %cst {dimension_numbers = #tpu.dot_dimension_numbers<[1], [0], [0], [1], [0, 0, 1, 1], [], []>} : vector<64x4xbf16>, vector<4x32xbf16>, vector<64x32xf32> -> vector<64x32xf32>
    %c0_4 = arith.constant 0 : index
    %c0_5 = arith.constant 0 : index
    %5 = vector.load %arg3[%c0_4, %c0_5] : memref<1x32xf32, #tpu.memory_space<vmem>>, vector<1x32xf32>
    %6 = vector.broadcast %5 : vector<1x32xf32> to vector<64x32xf32>
    %7 = arith.addf %4, %6 : vector<64x32xf32>
    %8 = arith.mulf %7, %7 : vector<64x32xf32>
    %9 = arith.mulf %7, %8 : vector<64x32xf32>
    %cst_6 = arith.constant 4.471500e-02 : f32
    %10 = vector.broadcast %cst_6 : f32 to vector<64x32xf32>
    %11 = arith.mulf %10, %9 : vector<64x32xf32>
    %12 = arith.addf %7, %11 : vector<64x32xf32>
    %cst_7 = arith.constant 0.797884583 : f32
    %13 = vector.broadcast %cst_7 : f32 to vector<64x32xf32>
    %14 = arith.mulf %13, %12 : vector<64x32xf32>
    %15 = math.tanh %14 : vector<64x32xf32>
    %cst_8 = arith.constant 1.000000e+00 : f32
    %16 = vector.broadcast %cst_8 : f32 to vector<64x32xf32>
    %17 = arith.addf %16, %15 : vector<64x32xf32>
    %cst_9 = arith.constant 5.000000e-01 : f32
    %18 = vector.broadcast %cst_9 : f32 to vector<64x32xf32>
    %19 = arith.mulf %18, %17 : vector<64x32xf32>
    %20 = arith.mulf %7, %19 : vector<64x32xf32>
    %c0_10 = arith.constant 0 : index
    %c0_11 = arith.constant 0 : index
    %21 = vector.load %arg4[%c0_10, %c0_11] : memref<32x16xbf16, #tpu.memory_space<vmem>>, vector<32x16xbf16>
    %22 = arith.truncf %20 : vector<64x32xf32> to vector<64x32xbf16>
    %cst_12 = arith.constant dense<0.000000e+00> : vector<64x16xf32>
    %23 = tpu.matmul %22, %21, %cst_12 {dimension_numbers = #tpu.dot_dimension_numbers<[1], [0], [0], [1], [0, 0, 1, 1], [], []>} : vector<64x32xbf16>, vector<32x16xbf16>, vector<64x16xf32> -> vector<64x16xf32>
    %c0_13 = arith.constant 0 : index
    %c0_14 = arith.constant 0 : index
    %24 = vector.load %arg5[%c0_13, %c0_14] : memref<1x16xf32, #tpu.memory_space<vmem>>, vector<1x16xf32>
    %25 = vector.broadcast %24 : vector<1x16xf32> to vector<64x16xf32>
    %26 = arith.addf %23, %25 : vector<64x16xf32>
    %c0_15 = arith.constant 0 : index
    %c0_16 = arith.constant 0 : index
    %27 = vector.load %arg13[%c0_15, %c0_16] : memref<16x32xbf16, #tpu.memory_space<vmem>>, vector<16x32xbf16>
    %c0_17 = arith.constant 0 : index
    %c0_18 = arith.constant 0 : index
    %28 = vector.load %arg14[%c0_17, %c0_18] : memref<32x16xbf16, #tpu.memory_space<vmem>>, vector<32x16xbf16>
    %c0_19 = arith.constant 0 : index
    %c0_20 = arith.constant 0 : index
    %c0_21 = arith.constant 0 : index
    %29 = vector.load %arg6[%c0_19, %c0_20, %c0_21] : memref<2x16x16xbf16, #tpu.memory_space<vmem>>, vector<1x16x16xbf16>
    %30 = vector.shape_cast %29 : vector<1x16x16xbf16> to vector<16x16xbf16>
    %c0_22 = arith.constant 0 : index
    %c0_23 = arith.constant 0 : index
    %c0_24 = arith.constant 0 : index
    %c0_25 = arith.constant 0 : index
    %31 = vector.load %arg7[%c0_22, %c0_23, %c0_24, %c0_25] : memref<2x8x32x32xbf16, #tpu.memory_space<vmem>>, vector<1x8x32x32xbf16>
    %32 = vector.shape_cast %31 : vector<1x8x32x32xbf16> to vector<8x32x32xbf16>
    %c0_26 = arith.constant 0 : index
    %c0_27 = arith.constant 0 : index
    %c0_28 = arith.constant 0 : index
    %33 = vector.load %arg8[%c0_26, %c0_27, %c0_28] : memref<2x1x16xf32, #tpu.memory_space<vmem>>, vector<1x1x16xf32>
    %34 = vector.shape_cast %33 : vector<1x1x16xf32> to vector<1x16xf32>
    %35 = arith.truncf %26 : vector<64x16xf32> to vector<64x16xbf16>
    %cst_29 = arith.constant dense<0.000000e+00> : vector<64x16xf32>
    %36 = tpu.matmul %35, %30, %cst_29 {dimension_numbers = #tpu.dot_dimension_numbers<[1], [0], [0], [1], [0, 0, 1, 1], [], []>} : vector<64x16xbf16>, vector<16x16xbf16>, vector<64x16xf32> -> vector<64x16xf32>
    %37 = vector.shape_cast %26 : vector<64x16xf32> to vector<2x32x16xf32>
    %38 = vector.extract_strided_slice %37 {offsets = [0, 0, 0], sizes = [1, 32, 16], strides = [1, 1, 1]} : vector<2x32x16xf32> to vector<1x32x16xf32>
    %39 = vector.shape_cast %38 : vector<1x32x16xf32> to vector<32x16xf32>
    %40 = arith.truncf %39 : vector<32x16xf32> to vector<32x16xbf16>
    %cst_30 = arith.constant dense<0.000000e+00> : vector<16x16xf32>
    %41 = tpu.matmul %27, %40, %cst_30 {dimension_numbers = #tpu.dot_dimension_numbers<[1], [0], [0], [1], [0, 0, 1, 1], [], []>} : vector<16x32xbf16>, vector<32x16xbf16>, vector<16x16xf32> -> vector<16x16xf32>
    %42 = vector.extract_strided_slice %41 {offsets = [0, 0], sizes = [8, 16], strides = [1, 1]} : vector<16x16xf32> to vector<8x16xf32>
    %43 = vector.extract_strided_slice %41 {offsets = [8, 0], sizes = [8, 16], strides = [1, 1]} : vector<16x16xf32> to vector<8x16xf32>
    %44 = tpu.concatenate %42, %43 in 1 : vector<8x16xf32>, vector<8x16xf32> -> vector<8x32xf32>
    %45 = vector.extract_strided_slice %37 {offsets = [1, 0, 0], sizes = [1, 32, 16], strides = [1, 1, 1]} : vector<2x32x16xf32> to vector<1x32x16xf32>
    %46 = vector.shape_cast %45 : vector<1x32x16xf32> to vector<32x16xf32>
    %47 = arith.truncf %46 : vector<32x16xf32> to vector<32x16xbf16>
    %cst_31 = arith.constant dense<0.000000e+00> : vector<16x16xf32>
    %48 = tpu.matmul %27, %47, %cst_31 {dimension_numbers = #tpu.dot_dimension_numbers<[1], [0], [0], [1], [0, 0, 1, 1], [], []>} : vector<16x32xbf16>, vector<32x16xbf16>, vector<16x16xf32> -> vector<16x16xf32>
    %49 = vector.extract_strided_slice %48 {offsets = [0, 0], sizes = [8, 16], strides = [1, 1]} : vector<16x16xf32> to vector<8x16xf32>
    %50 = vector.extract_strided_slice %48 {offsets = [8, 0], sizes = [8, 16], strides = [1, 1]} : vector<16x16xf32> to vector<8x16xf32>
    %51 = tpu.concatenate %49, %50 in 1 : vector<8x16xf32>, vector<8x16xf32> -> vector<8x32xf32>
    %52 = vector.shape_cast %44 : vector<8x32xf32> to vector<8x1x32xf32>
    %53 = vector.shape_cast %51 : vector<8x32xf32> to vector<8x1x32xf32>
    %54 = tpu.concatenate %52, %53 in 1 : vector<8x1x32xf32>, vector<8x1x32xf32> -> vector<8x2x32xf32>
    %55 = arith.truncf %54 : vector<8x2x32xf32> to vector<8x2x32xbf16>
    "tpu.trace_start"() <{level = 10 : i32, message = "kbe,ked->kbd"}> : () -> ()
    %cst_32 = arith.constant dense<0.000000e+00> : vector<8x2x32xf32>
    %56 = tpu.matmul %55, %32, %cst_32 {dimension_numbers = #tpu.dot_dimension_numbers<[2], [1], [1], [2], [0, 0, 0, 1, 1, 2], [0], [0]>} : vector<8x2x32xbf16>, vector<8x32x32xbf16>, vector<8x2x32xf32> -> vector<8x2x32xf32>
    "tpu.trace_stop"() : () -> ()
    %57 = vector.extract_strided_slice %56 {offsets = [0, 0, 0], sizes = [8, 1, 32], strides = [1, 1, 1]} : vector<8x2x32xf32> to vector<8x1x32xf32>
    %58 = vector.shape_cast %57 : vector<8x1x32xf32> to vector<8x32xf32>
    %59 = vector.extract_strided_slice %58 {offsets = [0, 0], sizes = [8, 16], strides = [1, 1]} : vector<8x32xf32> to vector<8x16xf32>
    %60 = vector.extract_strided_slice %58 {offsets = [0, 16], sizes = [8, 16], strides = [1, 1]} : vector<8x32xf32> to vector<8x16xf32>
    %61 = tpu.concatenate %59, %60 in 0 : vector<8x16xf32>, vector<8x16xf32> -> vector<16x16xf32>
    %62 = arith.truncf %61 : vector<16x16xf32> to vector<16x16xbf16>
    %cst_33 = arith.constant dense<0.000000e+00> : vector<32x16xf32>
    %63 = tpu.matmul %28, %62, %cst_33 {dimension_numbers = #tpu.dot_dimension_numbers<[1], [0], [0], [1], [0, 0, 1, 1], [], []>} : vector<32x16xbf16>, vector<16x16xbf16>, vector<32x16xf32> -> vector<32x16xf32>
    %64 = vector.extract_strided_slice %56 {offsets = [0, 1, 0], sizes = [8, 1, 32], strides = [1, 1, 1]} : vector<8x2x32xf32> to vector<8x1x32xf32>
    %65 = vector.shape_cast %64 : vector<8x1x32xf32> to vector<8x32xf32>
    %66 = vector.extract_strided_slice %65 {offsets = [0, 0], sizes = [8, 16], strides = [1, 1]} : vector<8x32xf32> to vector<8x16xf32>
    %67 = vector.extract_strided_slice %65 {offsets = [0, 16], sizes = [8, 16], strides = [1, 1]} : vector<8x32xf32> to vector<8x16xf32>
    %68 = tpu.concatenate %66, %67 in 0 : vector<8x16xf32>, vector<8x16xf32> -> vector<16x16xf32>
    %69 = arith.truncf %68 : vector<16x16xf32> to vector<16x16xbf16>
    %cst_34 = arith.constant dense<0.000000e+00> : vector<32x16xf32>
    %70 = tpu.matmul %28, %69, %cst_34 {dimension_numbers = #tpu.dot_dimension_numbers<[1], [0], [0], [1], [0, 0, 1, 1], [], []>} : vector<32x16xbf16>, vector<16x16xbf16>, vector<32x16xf32> -> vector<32x16xf32>
    %71 = tpu.concatenate %63, %70 in 0 : vector<32x16xf32>, vector<32x16xf32> -> vector<64x16xf32>
    %72 = vector.broadcast %34 : vector<1x16xf32> to vector<64x16xf32>
    %73 = arith.addf %71, %72 : vector<64x16xf32>
    %74 = arith.addf %73, %36 : vector<64x16xf32>
    %75 = arith.mulf %74, %74 : vector<64x16xf32>
    %76 = arith.mulf %74, %75 : vector<64x16xf32>
    %cst_35 = arith.constant 4.471500e-02 : f32
    %77 = vector.broadcast %cst_35 : f32 to vector<64x16xf32>
    %78 = arith.mulf %77, %76 : vector<64x16xf32>
    %79 = arith.addf %74, %78 : vector<64x16xf32>
    %cst_36 = arith.constant 0.797884583 : f32
    %80 = vector.broadcast %cst_36 : f32 to vector<64x16xf32>
    %81 = arith.mulf %80, %79 : vector<64x16xf32>
    %82 = math.tanh %81 : vector<64x16xf32>
    %cst_37 = arith.constant 1.000000e+00 : f32
    %83 = vector.broadcast %cst_37 : f32 to vector<64x16xf32>
    %84 = arith.addf %83, %82 : vector<64x16xf32>
    %cst_38 = arith.constant 5.000000e-01 : f32
    %85 = vector.broadcast %cst_38 : f32 to vector<64x16xf32>
    %86 = arith.mulf %85, %84 : vector<64x16xf32>
    %87 = arith.mulf %74, %86 : vector<64x16xf32>
    %c1 = arith.constant 1 : index
    %c0_39 = arith.constant 0 : index
    %c0_40 = arith.constant 0 : index
    %88 = vector.load %arg6[%c1, %c0_39, %c0_40] : memref<2x16x16xbf16, #tpu.memory_space<vmem>>, vector<1x16x16xbf16>
    %89 = vector.shape_cast %88 : vector<1x16x16xbf16> to vector<16x16xbf16>
    %c1_41 = arith.constant 1 : index
    %c0_42 = arith.constant 0 : index
    %c0_43 = arith.constant 0 : index
    %c0_44 = arith.constant 0 : index
    %90 = vector.load %arg7[%c1_41, %c0_42, %c0_43, %c0_44] : memref<2x8x32x32xbf16, #tpu.memory_space<vmem>>, vector<1x8x32x32xbf16>
    %91 = vector.shape_cast %90 : vector<1x8x32x32xbf16> to vector<8x32x32xbf16>
    %c1_45 = arith.constant 1 : index
    %c0_46 = arith.constant 0 : index
    %c0_47 = arith.constant 0 : index
    %92 = vector.load %arg8[%c1_45, %c0_46, %c0_47] : memref<2x1x16xf32, #tpu.memory_space<vmem>>, vector<1x1x16xf32>
    %93 = vector.shape_cast %92 : vector<1x1x16xf32> to vector<1x16xf32>
    %94 = arith.truncf %87 : vector<64x16xf32> to vector<64x16xbf16>
    %cst_48 = arith.constant dense<0.000000e+00> : vector<64x16xf32>
    %95 = tpu.matmul %94, %89, %cst_48 {dimension_numbers = #tpu.dot_dimension_numbers<[1], [0], [0], [1], [0, 0, 1, 1], [], []>} : vector<64x16xbf16>, vector<16x16xbf16>, vector<64x16xf32> -> vector<64x16xf32>
    %96 = vector.shape_cast %87 : vector<64x16xf32> to vector<2x32x16xf32>
    %97 = vector.extract_strided_slice %96 {offsets = [0, 0, 0], sizes = [1, 32, 16], strides = [1, 1, 1]} : vector<2x32x16xf32> to vector<1x32x16xf32>
    %98 = vector.shape_cast %97 : vector<1x32x16xf32> to vector<32x16xf32>
    %99 = arith.truncf %98 : vector<32x16xf32> to vector<32x16xbf16>
    %cst_49 = arith.constant dense<0.000000e+00> : vector<16x16xf32>
    %100 = tpu.matmul %27, %99, %cst_49 {dimension_numbers = #tpu.dot_dimension_numbers<[1], [0], [0], [1], [0, 0, 1, 1], [], []>} : vector<16x32xbf16>, vector<32x16xbf16>, vector<16x16xf32> -> vector<16x16xf32>
    %101 = vector.extract_strided_slice %100 {offsets = [0, 0], sizes = [8, 16], strides = [1, 1]} : vector<16x16xf32> to vector<8x16xf32>
    %102 = vector.extract_strided_slice %100 {offsets = [8, 0], sizes = [8, 16], strides = [1, 1]} : vector<16x16xf32> to vector<8x16xf32>
    %103 = tpu.concatenate %101, %102 in 1 : vector<8x16xf32>, vector<8x16xf32> -> vector<8x32xf32>
    %104 = vector.extract_strided_slice %96 {offsets = [1, 0, 0], sizes = [1, 32, 16], strides = [1, 1, 1]} : vector<2x32x16xf32> to vector<1x32x16xf32>
    %105 = vector.shape_cast %104 : vector<1x32x16xf32> to vector<32x16xf32>
    %106 = arith.truncf %105 : vector<32x16xf32> to vector<32x16xbf16>
    %cst_50 = arith.constant dense<0.000000e+00> : vector<16x16xf32>
    %107 = tpu.matmul %27, %106, %cst_50 {dimension_numbers = #tpu.dot_dimension_numbers<[1], [0], [0], [1], [0, 0, 1, 1], [], []>} : vector<16x32xbf16>, vector<32x16xbf16>, vector<16x16xf32> -> vector<16x16xf32>
    %108 = vector.extract_strided_slice %107 {offsets = [0, 0], sizes = [8, 16], strides = [1, 1]} : vector<16x16xf32> to vector<8x16xf32>
    %109 = vector.extract_strided_slice %107 {offsets = [8, 0], sizes = [8, 16], strides = [1, 1]} : vector<16x16xf32> to vector<8x16xf32>
    %110 = tpu.concatenate %108, %109 in 1 : vector<8x16xf32>, vector<8x16xf32> -> vector<8x32xf32>
    %111 = vector.shape_cast %103 : vector<8x32xf32> to vector<8x1x32xf32>
    %112 = vector.shape_cast %110 : vector<8x32xf32> to vector<8x1x32xf32>
    %113 = tpu.concatenate %111, %112 in 1 : vector<8x1x32xf32>, vector<8x1x32xf32> -> vector<8x2x32xf32>
    %114 = arith.truncf %113 : vector<8x2x32xf32> to vector<8x2x32xbf16>
    "tpu.trace_start"() <{level = 10 : i32, message = "kbe,ked->kbd"}> : () -> ()
    %cst_51 = arith.constant dense<0.000000e+00> : vector<8x2x32xf32>
    %115 = tpu.matmul %114, %91, %cst_51 {dimension_numbers = #tpu.dot_dimension_numbers<[2], [1], [1], [2], [0, 0, 0, 1, 1, 2], [0], [0]>} : vector<8x2x32xbf16>, vector<8x32x32xbf16>, vector<8x2x32xf32> -> vector<8x2x32xf32>
    "tpu.trace_stop"() : () -> ()
    %116 = vector.extract_strided_slice %115 {offsets = [0, 0, 0], sizes = [8, 1, 32], strides = [1, 1, 1]} : vector<8x2x32xf32> to vector<8x1x32xf32>
    %117 = vector.shape_cast %116 : vector<8x1x32xf32> to vector<8x32xf32>
    %118 = vector.extract_strided_slice %117 {offsets = [0, 0], sizes = [8, 16], strides = [1, 1]} : vector<8x32xf32> to vector<8x16xf32>
    %119 = vector.extract_strided_slice %117 {offsets = [0, 16], sizes = [8, 16], strides = [1, 1]} : vector<8x32xf32> to vector<8x16xf32>
    %120 = tpu.concatenate %118, %119 in 0 : vector<8x16xf32>, vector<8x16xf32> -> vector<16x16xf32>
    %121 = arith.truncf %120 : vector<16x16xf32> to vector<16x16xbf16>
    %cst_52 = arith.constant dense<0.000000e+00> : vector<32x16xf32>
    %122 = tpu.matmul %28, %121, %cst_52 {dimension_numbers = #tpu.dot_dimension_numbers<[1], [0], [0], [1], [0, 0, 1, 1], [], []>} : vector<32x16xbf16>, vector<16x16xbf16>, vector<32x16xf32> -> vector<32x16xf32>
    %123 = vector.extract_strided_slice %115 {offsets = [0, 1, 0], sizes = [8, 1, 32], strides = [1, 1, 1]} : vector<8x2x32xf32> to vector<8x1x32xf32>
    %124 = vector.shape_cast %123 : vector<8x1x32xf32> to vector<8x32xf32>
    %125 = vector.extract_strided_slice %124 {offsets = [0, 0], sizes = [8, 16], strides = [1, 1]} : vector<8x32xf32> to vector<8x16xf32>
    %126 = vector.extract_strided_slice %124 {offsets = [0, 16], sizes = [8, 16], strides = [1, 1]} : vector<8x32xf32> to vector<8x16xf32>
    %127 = tpu.concatenate %125, %126 in 0 : vector<8x16xf32>, vector<8x16xf32> -> vector<16x16xf32>
    %128 = arith.truncf %127 : vector<16x16xf32> to vector<16x16xbf16>
    %cst_53 = arith.constant dense<0.000000e+00> : vector<32x16xf32>
    %129 = tpu.matmul %28, %128, %cst_53 {dimension_numbers = #tpu.dot_dimension_numbers<[1], [0], [0], [1], [0, 0, 1, 1], [], []>} : vector<32x16xbf16>, vector<16x16xbf16>, vector<32x16xf32> -> vector<32x16xf32>
    %130 = tpu.concatenate %122, %129 in 0 : vector<32x16xf32>, vector<32x16xf32> -> vector<64x16xf32>
    %131 = vector.broadcast %93 : vector<1x16xf32> to vector<64x16xf32>
    %132 = arith.addf %130, %131 : vector<64x16xf32>
    %133 = arith.addf %132, %95 : vector<64x16xf32>
    %c0_54 = arith.constant 0 : index
    %c0_55 = arith.constant 0 : index
    %134 = vector.load %arg9[%c0_54, %c0_55] : memref<16x32xbf16, #tpu.memory_space<vmem>>, vector<16x32xbf16>
    %135 = arith.truncf %133 : vector<64x16xf32> to vector<64x16xbf16>
    %cst_56 = arith.constant dense<0.000000e+00> : vector<64x32xf32>
    %136 = tpu.matmul %135, %134, %cst_56 {dimension_numbers = #tpu.dot_dimension_numbers<[1], [0], [0], [1], [0, 0, 1, 1], [], []>} : vector<64x16xbf16>, vector<16x32xbf16>, vector<64x32xf32> -> vector<64x32xf32>
    %c0_57 = arith.constant 0 : index
    %c0_58 = arith.constant 0 : index
    %137 = vector.load %arg10[%c0_57, %c0_58] : memref<1x32xf32, #tpu.memory_space<vmem>>, vector<1x32xf32>
    %138 = vector.broadcast %137 : vector<1x32xf32> to vector<64x32xf32>
    %139 = arith.addf %136, %138 : vector<64x32xf32>
    %140 = arith.mulf %139, %139 : vector<64x32xf32>
    %141 = arith.mulf %139, %140 : vector<64x32xf32>
    %cst_59 = arith.constant 4.471500e-02 : f32
    %142 = vector.broadcast %cst_59 : f32 to vector<64x32xf32>
    %143 = arith.mulf %142, %141 : vector<64x32xf32>
    %144 = arith.addf %139, %143 : vector<64x32xf32>
    %cst_60 = arith.constant 0.797884583 : f32
    %145 = vector.broadcast %cst_60 : f32 to vector<64x32xf32>
    %146 = arith.mulf %145, %144 : vector<64x32xf32>
    %147 = math.tanh %146 : vector<64x32xf32>
    %cst_61 = arith.constant 1.000000e+00 : f32
    %148 = vector.broadcast %cst_61 : f32 to vector<64x32xf32>
    %149 = arith.addf %148, %147 : vector<64x32xf32>
    %cst_62 = arith.constant 5.000000e-01 : f32
    %150 = vector.broadcast %cst_62 : f32 to vector<64x32xf32>
    %151 = arith.mulf %150, %149 : vector<64x32xf32>
    %152 = arith.mulf %139, %151 : vector<64x32xf32>
    %c0_63 = arith.constant 0 : index
    %c0_64 = arith.constant 0 : index
    %153 = vector.load %arg11[%c0_63, %c0_64] : memref<32x4xbf16, #tpu.memory_space<vmem>>, vector<32x4xbf16>
    %154 = arith.truncf %152 : vector<64x32xf32> to vector<64x32xbf16>
    %cst_65 = arith.constant dense<0.000000e+00> : vector<64x4xf32>
    %155 = tpu.matmul %154, %153, %cst_65 {dimension_numbers = #tpu.dot_dimension_numbers<[1], [0], [0], [1], [0, 0, 1, 1], [], []>} : vector<64x32xbf16>, vector<32x4xbf16>, vector<64x4xf32> -> vector<64x4xf32>
    %c0_66 = arith.constant 0 : index
    %c0_67 = arith.constant 0 : index
    %156 = vector.load %arg12[%c0_66, %c0_67] : memref<1x4xf32, #tpu.memory_space<vmem>>, vector<1x4xf32>
    %157 = vector.broadcast %156 : vector<1x4xf32> to vector<64x4xf32>
    %158 = arith.addf %155, %157 : vector<64x4xf32>
    %159 = vector.shape_cast %158 : vector<64x4xf32> to vector<2x32x4xf32>
    %c0_68 = arith.constant 0 : index
    %c0_69 = arith.constant 0 : index
    %c0_70 = arith.constant 0 : index
    %160 = vector.load %arg15[%c0_68, %c0_69, %c0_70] : memref<2x32x4xf32, #tpu.memory_space<vmem>>, vector<2x32x4xf32>
    tpu.vector_store %arg15[%c0_68, %c0_69, %c0_70], %159 {strides = array<i32>} : memref<2x32x4xf32, #tpu.memory_space<vmem>>, vector<2x32x4xf32>,
    return
  }
  func.func @transform_0(%arg0: i32) -> (i32, i32, i32) {
    %c0_i32 = arith.constant 0 : i32
    %c0_i32_0 = arith.constant 0 : i32
    %c0_i32_1 = arith.constant 0 : i32
    return %arg0, %c0_i32, %c0_i32_0 : i32, i32, i32
  }
  func.func @transform_1(%arg0: i32) -> (i32, i32) {
    %c0_i32 = arith.constant 0 : i32
    %c0_i32_0 = arith.constant 0 : i32
    %c0_i32_1 = arith.constant 0 : i32
    return %c0_i32, %c0_i32_0 : i32, i32
  }
  func.func @transform_2(%arg0: i32) -> (i32, i32) {
    %c0_i32 = arith.constant 0 : i32
    %c0_i32_0 = arith.constant 0 : i32
    %c0_i32_1 = arith.constant 0 : i32
    return %c0_i32, %c0_i32_0 : i32, i32
  }
  func.func @transform_3(%arg0: i32) -> (i32, i32) {
    %c0_i32 = arith.constant 0 : i32
    %c0_i32_0 = arith.constant 0 : i32
    %c0_i32_1 = arith.constant 0 : i32
    return %c0_i32, %c0_i32_0 : i32, i32
  }
  func.func @transform_4(%arg0: i32) -> (i32, i32) {
    %c0_i32 = arith.constant 0 : i32
    %c0_i32_0 = arith.constant 0 : i32
    %c0_i32_1 = arith.constant 0 : i32
    return %c0_i32, %c0_i32_0 : i32, i32
  }
  func.func @transform_5(%arg0: i32) -> (i32, i32, i32) {
    %c0_i32 = arith.constant 0 : i32
    %c0_i32_0 = arith.constant 0 : i32
    %c0_i32_1 = arith.constant 0 : i32
    %c0_i32_2 = arith.constant 0 : i32
    return %c0_i32, %c0_i32_0, %c0_i32_1 : i32, i32, i32
  }
  func.func @transform_6(%arg0: i32) -> (i32, i32, i32, i32) {
    %c0_i32 = arith.constant 0 : i32
    %c0_i32_0 = arith.constant 0 : i32
    %c0_i32_1 = arith.constant 0 : i32
    %c0_i32_2 = arith.constant 0 : i32
    %c0_i32_3 = arith.constant 0 : i32
    return %c0_i32, %c0_i32_0, %c0_i32_1, %c0_i32_2 : i32, i32, i32, i32
  }
  func.func @transform_7(%arg0: i32) -> (i32, i32, i32) {
    %c0_i32 = arith.constant 0 : i32
    %c0_i32_0 = arith.constant 0 : i32
    %c0_i32_1 = arith.constant 0 : i32
    %c0_i32_2 = arith.constant 0 : i32
    return %c0_i32, %c0_i32_0, %c0_i32_1 : i32, i32, i32
  }
  func.func @transform_8(%arg0: i32) -> (i32, i32) {
    %c0_i32 = arith.constant 0 : i32
    %c0_i32_0 = arith.constant 0 : i32
    %c0_i32_1 = arith.constant 0 : i32
    return %c0_i32, %c0_i32_0 : i32, i32
  }
  func.func @transform_9(%arg0: i32) -> (i32, i32) {
    %c0_i32 = arith.constant 0 : i32
    %c0_i32_0 = arith.constant 0 : i32
    %c0_i32_1 = arith.constant 0 : i32
    return %c0_i32, %c0_i32_0 : i32, i32
  }
  func.func @transform_10(%arg0: i32) -> (i32, i32) {
    %c0_i32 = arith.constant 0 : i32
    %c0_i32_0 = arith.constant 0 : i32
    %c0_i32_1 = arith.constant 0 : i32
    return %c0_i32, %c0_i32_0 : i32, i32
  }
  func.func @transform_11(%arg0: i32) -> (i32, i32) {
    %c0_i32 = arith.constant 0 : i32
    %c0_i32_0 = arith.constant 0 : i32
    %c0_i32_1 = arith.constant 0 : i32
    return %c0_i32, %c0_i32_0 : i32, i32
  }
  func.func @transform_12(%arg0: i32) -> (i32, i32) {
    %c0_i32 = arith.constant 0 : i32
    %c0_i32_0 = arith.constant 0 : i32
    %c0_i32_1 = arith.constant 0 : i32
    return %c0_i32, %c0_i32_0 : i32, i32
  }
  func.func @transform_13(%arg0: i32) -> (i32, i32) {
    %c0_i32 = arith.constant 0 : i32
    %c0_i32_0 = arith.constant 0 : i32
    %c0_i32_1 = arith.constant 0 : i32
    return %c0_i32, %c0_i32_0 : i32, i32
  }
  func.func @transform_14(%arg0: i32) -> (i32, i32, i32) {
    %c0_i32 = arith.constant 0 : i32
    %c0_i32_0 = arith.constant 0 : i32
    %c0_i32_1 = arith.constant 0 : i32
    return %arg0, %c0_i32, %c0_i32_0 : i32, i32, i32
  }
}

</mosaic_0001>

<bundles_post_ra>
// kernel: tpu_custom_call.1
= control target key start
LH: loop header
LB: loop body
LE: loop exit
PB: predicated region body
PF: predicated region fallthrough
CT: control target
= control target key end

     0   :  { %19 = vsyncpa [#allocation3], 0  ;;  %s1960_s16 = smov [#allocation2]   ;;  %s1961_s18 = smov 64   ;;  %s2346_s0 = inlined_call_operand.vmem [shape: f32[2,32,4], index: 0, kind: input, shape index: {}]   ;;  %s2347_s1 = inlined_call_operand.vmem [shape: bf16[4,32], index: 1, kind: input, shape index: {}]   ;;  %s2348_s2 = inlined_call_operand.vmem [shape: f32[1,32], index: 2, kind: input, shape index: {}]   ;;  %s2349_s3 = inlined_call_operand.vmem [shape: bf16[32,16], index: 3, kind: input, shape index: {}]   ;;  %s2350_s4 = inlined_call_operand.vmem [shape: f32[1,16], index: 4, kind: input, shape index: {}]   ;;  %s2351_s5 = inlined_call_operand.vmem [shape: bf16[2,16,16], index: 5, kind: input, shape index: {}]   ;;  %s2352_s6 = inlined_call_operand.hbm [shape: bf16[2,8,32,32], index: 6, kind: input, shape index: {}]   ;;  %s2353_s7 = inlined_call_operand.vmem [shape: f32[2,1,16], index: 7, kind: input, shape index: {}]   ;;  %s2354_s8 = inlined_call_operand.vmem [shape: bf16[16,32], index: 8, kind: input, shape index: {}]   ;;  %s2355_s9 = inlined_call_operand.vmem [shape: f32[1,32], index: 9, kind: input, shape index: {}]   ;;  %s2356_s10 = inlined_call_operand.vmem [shape: bf16[32,4], index: 10, kind: input, shape index: {}]   ;;  %s2357_s11 = inlined_call_operand.vmem [shape: f32[1,4], index: 11, kind: input, shape index: {}]   ;;  %s2358_s12 = inlined_call_operand.vmem [shape: bf16[16,32], index: 12, kind: input, shape index: {}]   ;;  %s2359_s13 = inlined_call_operand.vmem [shape: bf16[32,16], index: 13, kind: input, shape index: {}]   ;;  %s2360_s14 = inlined_call_operand.vmem [shape: f32[2,32,4], index: 14, kind: output, shape index: {}]  }
   0x1   :  { %s36_s15 = sshll.u32 %s2352_s6, 4  ;;  %s38_s17 = sshll.u32 %s1960_s16, 4  ;;  %s37_s15 = int_to_ptr.hbm [resolvable:$true] %s36_s15  ;;  %s39_s17 = int_to_ptr.vmem [resolvable:$true] %s38_s17 }
   0x2   :  { %s1962_s19 = smov 4  }
   0x3   :  { %44 = dma.hbm_to_vmem [thread:$0]  %s37_s15, 4096, %s39_s17, [#allocation3], %s1961_s18, %s1961_s18, %s1962_s19  }
   0x4   :  { %1958 = dma.done.wait [#allocation3], 4096  }
   0x5   :  { %1959 = vsyncadd [#allocation3], 4294963200  ;;  %vm94_vm0 = vcmask 1041408   ;;  %v72_v0 = vld [vmem:[%s2347_s1] sm:$0x3]  ;;  %v65_v2 = vld [vmem:[%s2346_s0 + $0x8] sm:$0xff] }
   0x6   :  { %v64_v1 = vld [vmem:[%s2346_s0] sm:$0xff]  ;;  %v96_v3 = vsel %vm94_vm0, %v72_v0, 0  ;;  %vm81_vm1 = vcmask 31744   ;;  %v66_v5 = vld [vmem:[%s2346_s0 + $0x10] sm:$0xff]  ;;  %v67_v6 = vld [vmem:[%s2346_s0 + $0x18] sm:$0xff]  ;;  %vm223_vm2 = vcmask 261120  }
   0x7   :  { %v73_v4 = vpack.c.bf16 %v65_v2, %v64_v1  ;;  %105 = vmatpush.bf16.msra.mxu0 %v96_v3  ;;  %v74_v7 = vpack.c.bf16 %v67_v6, %v66_v5  ;;  %v68_v8 = vld [vmem:[%s2346_s0 + $0x20] sm:$0xff]  ;;  %v69_v9 = vld [vmem:[%s2346_s0 + $0x28] sm:$0xff]  ;;  %v70_v11 = vld [vmem:[%s2346_s0 + $0x30] sm:$0xff]  ;;  %vm316_vm3 = vcmask 130048   ;;  %vm443_vm4 = vcmask 1040384   ;;  %s1964_s27 = smov 112  }
   0x8   :  { %v75_v10 = vpack.c.bf16 %v69_v9, %v68_v8  ;;  %v71_v12 = vld [vmem:[%s2346_s0 + $0x38] sm:$0xff]  ;;  %v1822_v14 = vld [vmem:[%s2349_s3 + $0x8] sm:$0xff]  ;;  %v2080_v15 = vld [vmem:[%s2348_s2] ss:$0 sm:$0xff]  ;;  %vm693_vm5 = vcmask 1041409   ;;  %vm696_vm6 = vcmask 1042434  }
   0x9   :  { %v76_v13 = vpack.c.bf16 %v71_v12, %v70_v11  ;;  %1863 = vmatpush.bf16.msra.mxu1 %v1822_v14  ;;  %v1821_v16 = vld [vmem:[%s2349_s3] sm:$0xff]  ;;  %vm699_vm7 = vcmask 1043459   ;;  %vm702_vm8 = vcmask 1044484   ;;  %vm705_vm9 = vcmask 1045509  }
   0xa   :  { %1598 = vmatmul.msk.bf16.vlgmr.msra.gmra.mxu0 %vm81_vm1, %v73_v4  ;;  %vm708_vm10 = vcmask 1046534   ;;  %vm711_vm11 = vcmask 1047559  }
   0xb   :  { %242 = vmatpush.bf16.msrb.mxu0 %v1822_v14 }
   0xd   :  { %1864 = vmatpush.bf16.msra.mxu1 %v1821_v16 }
   0xf   :  { %243 = vmatpush.bf16.msrb.mxu0 %v1821_v16 }
  0x1a   :  { %1599 = vmatmul.msk.bf16.gmra.mxu0 %vm81_vm1, %v74_v7 }
  0x2a   :  { %1600 = vmatmul.msk.bf16.gmra.mxu0 %vm81_vm1, %v75_v10 }
  0x3a   :  { %1601 = vmatmul.msk.bf16.gmra.mxu0 %vm81_vm1, %v76_v13 }
  0x87   :  { %v107_v17 = vpop.f32.mrf.mxu0 }
  0x88   :  { %v108_v18 = vadd.f32 %v2080_v15, %v107_v17 }
  0x8a   :  { %v127_v19 = vmul.f32 %v108_v18, %v108_v18 }
  0x8c   :  { %v135_v20 = vmul.f32 %v127_v19, %v108_v18 }
  0x8e   :  { %v143_v21 = vmul.f32 0.044715, %v135_v20 }
  0x8f   :  { %v109_v22 = vpop.f32.mrf.mxu0 }
  0x90   :  { %v151_v23 = vadd.f32 %v143_v21, %v108_v18  ;;  %v110_v24 = vadd.f32 %v2080_v15, %v109_v22 }
  0x92   :  { %v159_v25 = vmul.f32 0.7978846, %v151_v23  ;;  %v128_v26 = vmul.f32 %v110_v24, %v110_v24 }
  0x94   :  { %v136_v27 = vmul.f32 %v128_v26, %v110_v24  ;;  %1886 = vtanh.f32 %v159_v25 }
  0x96   :  { %v144_v28 = vmul.f32 0.044715, %v136_v27 }
  0x97   :  { %v112_v29 = vpop.f32.mrf.mxu0 }
  0x98   :  { %v152_v30 = vadd.f32 %v144_v28, %v110_v24  ;;  %v113_v31 = vadd.f32 %v2080_v15, %v112_v29 }
  0x9a   :  { %v160_v32 = vmul.f32 0.7978846, %v152_v30  ;;  %v129_v33 = vmul.f32 %v113_v31, %v113_v31  ;;  %v1887_v34 = vpop.eup %1886 }
  0x9b   :  { %v175_v37 = vadd.f32 1.0, %v1887_v34 }
  0x9c   :  { %1888 = vtanh.f32 %v160_v32  ;;  %v137_v35 = vmul.f32 %v129_v33, %v113_v31 }
  0x9d   :  { %v183_v44 = vmul.f32 0.5, %v175_v37 }
  0x9e   :  { %v145_v36 = vmul.f32 0.044715, %v137_v35 }
  0x9f   :  { %v114_v38 = vpop.f32.mrf.mxu0  ;;  %v191_v49 = vmul.f32 %v183_v44, %v108_v18 }
  0xa0   :  { %v153_v39 = vadd.f32 %v145_v36, %v113_v31  ;;  %v115_v40 = vadd.f32 %v2080_v15, %v114_v38 }
  0xa2   :  { %v1889_v41 = vpop.eup %1888  ;;  %v161_v42 = vmul.f32 0.7978846, %v153_v39  ;;  %v130_v43 = vmul.f32 %v115_v40, %v115_v40 }
  0xa3   :  { %v176_v45 = vadd.f32 1.0, %v1889_v41 }
  0xa4   :  { %v138_v46 = vmul.f32 %v130_v43, %v115_v40  ;;  %1890 = vtanh.f32 %v161_v42 }
  0xa5   :  { %v184_v47 = vmul.f32 0.5, %v176_v45  ;;  %v1826_v45 = vld [vmem:[%s2351_s5] sm:$0xff] }
  0xa6   :  { %v146_v48 = vmul.f32 0.044715, %v138_v46  ;;  %336 = vmatpush.bf16.msra.mxu2 %v1826_v45 }
  0xa7   :  { %v117_v50 = vpop.f32.mrf.mxu0  ;;  %v192_v51 = vmul.f32 %v184_v47, %v110_v24  ;;  %v1881_v47 = vld [vmem:[%s2350_s4] ss:$0 sm:$0xff] }
  0xa8   :  { %v154_v52 = vadd.f32 %v146_v48, %v115_v40  ;;  %v118_v53 = vadd.f32 %v2080_v15, %v117_v50 }
  0xa9   :  { %v203_v54 = vpack.c.bf16 %v192_v51, %v191_v49 }
  0xaa   :  { %v162_v55 = vmul.f32 0.7978846, %v154_v52  ;;  %v131_v56 = vmul.f32 %v118_v53, %v118_v53  ;;  %v1891_v57 = vpop.eup %1890 }
  0xab   :  { %1610 = vmatmul.msk.bf16.vlgmr.msrb.gmra.mxu0 %vm223_vm2, %v203_v54  ;;  %v177_v61 = vadd.f32 1.0, %v1891_v57 }
  0xac   :  { %1892 = vtanh.f32 %v162_v55  ;;  %v139_v58 = vmul.f32 %v131_v56, %v118_v53 }
  0xad   :  { %v185_v4 = vmul.f32 0.5, %v177_v61 }
  0xae   :  { %v147_v59 = vmul.f32 0.044715, %v139_v58 }
  0xaf   :  { %v119_v60 = vpop.f32.mrf.mxu0  ;;  %v193_v9 = vmul.f32 %v185_v4, %v113_v31 }
  0xb0   :  { %v155_v62 = vadd.f32 %v147_v59, %v118_v53  ;;  %v120_v63 = vadd.f32 %v2080_v15, %v119_v60 }
  0xb2   :  { %v1893_v0 = vpop.eup %1892  ;;  %v163_v1 = vmul.f32 0.7978846, %v155_v62  ;;  %v132_v2 = vmul.f32 %v120_v63, %v120_v63 }
  0xb3   :  { %v178_v3 = vadd.f32 1.0, %v1893_v0 }
  0xb4   :  { %v140_v5 = vmul.f32 %v132_v2, %v120_v63  ;;  %1894 = vtanh.f32 %v163_v1 }
  0xb5   :  { %v186_v6 = vmul.f32 0.5, %v178_v3  ;;  %v2110_v3 = vld [vmem:[%s2358_s12] sm:$0xff]  ;;  %s1963_s12 = smov 16  }
  0xb6   :  { %v148_v7 = vmul.f32 0.044715, %v140_v5 }
  0xb7   :  { %v122_v8 = vpop.f32.mrf.mxu0  ;;  %v194_v10 = vmul.f32 %v186_v6, %v115_v40 }
  0xb8   :  { %v156_v11 = vadd.f32 %v148_v7, %v120_v63  ;;  %v123_v12 = vadd.f32 %v2080_v15, %v122_v8 }
  0xb9   :  { %v204_v13 = vpack.c.bf16 %v194_v10, %v193_v9 }
  0xba   :  { %v164_v14 = vmul.f32 0.7978846, %v156_v11  ;;  %v133_v16 = vmul.f32 %v123_v12, %v123_v12  ;;  %v1895_v17 = vpop.eup %1894 }
  0xbb   :  { %1611 = vmatmul.msk.bf16.vlgmr.msra.gmra.mxu1 %vm223_vm2, %v204_v13  ;;  %v179_v21 = vadd.f32 1.0, %v1895_v17 }
  0xbc   :  { %1896 = vtanh.f32 %v164_v14  ;;  %v141_v18 = vmul.f32 %v133_v16, %v123_v12 }
  0xbd   :  { %v187_v28 = vmul.f32 0.5, %v179_v21  ;;  %v1836_v21 = vld [vmem:[#allocation2 + $0x48] sm:$0xff] }
  0xbe   :  { %v149_v19 = vmul.f32 0.044715, %v141_v18  ;;  %v1828_v18 = vld [vmem:[#allocation2 + $0x8] sm:$0xff]  ;;  %593 = vmatpush.bf16.msrb.mxu1 %v1836_v21 }
  0xbf   :  { %v124_v20 = vpop.f32.mrf.mxu0  ;;  %v195_v32 = vmul.f32 %v187_v28, %v118_v53  ;;  %v1842_v28 = vld [vmem:[#allocation2 + $0x78] sm:$0xff] }
  0xc0   :  { %v157_v22 = vadd.f32 %v149_v19, %v123_v12  ;;  %v125_v23 = vadd.f32 %v2080_v15, %v124_v20  ;;  %v1832_v19 = vld [vmem:[#allocation2 + $0x28] sm:$0xff]  ;;  %v1834_v20 = vld [vmem:[#allocation2 + $0x38] sm:$0xff] }
  0xc1   :  { %537 = vmatpush.bf16.msra.mxu0 %v1832_v19 }
  0xc2   :  { %v1897_v24 = vpop.eup %1896  ;;  %v165_v25 = vmul.f32 0.7978846, %v157_v22  ;;  %v134_v26 = vmul.f32 %v125_v23, %v125_v23  ;;  %v1827_v22 = vld [vmem:[#allocation2] sm:$0xff] }
  0xc3   :  { %v180_v27 = vadd.f32 1.0, %v1897_v24  ;;  %v1833_v24 = vld [vmem:[#allocation2 + $0x30] sm:$0xff] }
  0xc4   :  { %v142_v29 = vmul.f32 %v134_v26, %v125_v23  ;;  %1898 = vtanh.f32 %v165_v25  ;;  %v1835_v25 = vld [vmem:[#allocation2 + $0x40] sm:$0xff]  ;;  %v1830_v26 = vld [vmem:[#allocation2 + $0x18] sm:$0xff] }
  0xc5   :  { %v188_v30 = vmul.f32 0.5, %v180_v27  ;;  %594 = vmatpush.bf16.msrb.mxu1 %v1835_v25  ;;  %v1840_v27 = vld [vmem:[#allocation2 + $0x68] sm:$0xff] }
  0xc6   :  { %v150_v31 = vmul.f32 0.044715, %v142_v29  ;;  %v1829_v29 = vld [vmem:[#allocation2 + $0x10] sm:$0xff] }
  0xc7   :  { %v196_v33 = vmul.f32 %v188_v30, %v120_v63  ;;  %v1839_v30 = vld [vmem:[#allocation2 + $0x60] sm:$0xff] }
  0xc8   :  { %v158_v34 = vadd.f32 %v150_v31, %v125_v23  ;;  %v1841_v31 = vld [vmem:[#allocation2 + $0x70] sm:$0xff] }
  0xc9   :  { %v205_v35 = vpack.c.bf16 %v196_v33, %v195_v32 }
  0xca   :  { %v166_v36 = vmul.f32 0.7978846, %v158_v34  ;;  %v1899_v37 = vpop.eup %1898 }
  0xcb   :  { %1612 = vmatmul.msk.bf16.gmra.mxu1 %vm223_vm2, %v205_v35  ;;  %v181_v38 = vadd.f32 1.0, %v1899_v37 }
  0xcc   :  { %1900 = vtanh.f32 %v166_v36 }
  0xcd   :  { %v189_v40 = vmul.f32 0.5, %v181_v38 }
  0xcf   :  { %v197_v42 = vmul.f32 %v189_v40, %v123_v12 }
  0xd2   :  { %v1901_v15 = vpop.eup %1900 }
  0xd3   :  { %v182_v39 = vadd.f32 1.0, %v1901_v15 }
  0xd5   :  { %v190_v41 = vmul.f32 0.5, %v182_v39 }
  0xd7   :  { %v198_v43 = vmul.f32 %v190_v41, %v125_v23  ;;  %v1831_v23 = vld [vmem:[#allocation2 + $0x20] sm:$0xff] }
  0xd8   :  { %538 = vmatpush.bf16.msra.mxu0 %v1831_v23 }
  0xd9   :  { %v206_v44 = vpack.c.bf16 %v198_v43, %v197_v42 }
  0xdb   :  { %1613 = vmatmul.msk.bf16.gmra.mxu1 %vm223_vm2, %v206_v44  ;;  %v1838_v44 = vld [vmem:[#allocation2 + $0x58] sm:$0xff] }
  0xdc   :  { %649 = vmatpush.bf16.msrb.mxu0 %v1840_v27 }
  0xe0   :  { %650 = vmatpush.bf16.msrb.mxu0 %v1839_v30 }
 0x128   :  { %v245_v46 = vpop.f32.mrf.mxu0 }
 0x129   :  { %v246_v49 = vadd.f32 %v1881_v47, %v245_v46 }
 0x130   :  { %v247_v48 = vpop.f32.mrf.mxu0 }
 0x131   :  { %v248_v50 = vadd.f32 %v1881_v47, %v247_v48 }
 0x133   :  { %v306_v51 = vpack.c.bf16 %v248_v50, %v246_v49 }
 0x135   :  { %1618 = vmatmul.msk.bf16.vlgmr.msra.gmra.mxu2 %vm316_vm3, %v306_v51 }
 0x138   :  { %v250_v52 = vpop.f32.mrf.mxu1 }
 0x139   :  { %v251_v54 = vadd.f32 %v1881_v47, %v250_v52 }
 0x140   :  { %v252_v53 = vpop.f32.mrf.mxu1 }
 0x141   :  { %v253_v55 = vadd.f32 %v1881_v47, %v252_v53 }
 0x143   :  { %v307_v56 = vpack.c.bf16 %v253_v55, %v251_v54  ;;  %v1837_v55 = vld [vmem:[#allocation2 + $0x50] sm:$0xff] }
 0x145   :  { %1619 = vmatmul.msk.bf16.gmra.mxu2 %vm316_vm3, %v307_v56 }
 0x146   :  { %372 = vmatpush.bf16.msrb.mxu2 %v307_v56 }
 0x148   :  { %v255_v57 = vpop.f32.mrf.mxu1 }
 0x149   :  { %v256_v59 = vadd.f32 %v1881_v47, %v255_v57 }
 0x14a   :  { %373 = vmatpush.bf16.msrb.mxu2 %v306_v51 }
 0x14e   :  { %565 = vmatpush.bf16.msra.mxu2 %v1834_v20 }
 0x150   :  { %v257_v58 = vpop.f32.mrf.mxu1 }
 0x151   :  { %v258_v60 = vadd.f32 %v1881_v47, %v257_v58 }
 0x152   :  { %566 = vmatpush.bf16.msra.mxu2 %v1833_v24 }
 0x153   :  { %v308_v61 = vpack.c.bf16 %v258_v60, %v256_v59 }
 0x155   :  { %1620 = vmatmul.msk.bf16.gmra.mxu2 %vm316_vm3, %v308_v61 }
 0x158   :  { %v260_v62 = vpop.f32.mrf.mxu1 }
 0x159   :  { %v261_v0 = vadd.f32 %v1881_v47, %v260_v62 }
 0x160   :  { %v262_v63 = vpop.f32.mrf.mxu1 }
 0x161   :  { %v263_v1 = vadd.f32 %v1881_v47, %v262_v63 }
 0x163   :  { %v309_v2 = vpack.c.bf16 %v263_v1, %v261_v0 }
 0x165   :  { %1621 = vmatmul.msk.bf16.gmra.mxu2 %vm316_vm3, %v309_v2  ;;  %391 = vmatpush.bf16.msra.mxu3 %v309_v2 }
 0x169   :  { %392 = vmatpush.bf16.msra.mxu3 %v308_v61 }
 0x16c   :  { %1627 = vmatmul.msk.bf16.vlgmr.msra.gmra.mxu3 %vm223_vm2, %v2110_v3 }
 0x16d   :  { %481 = vmatpush.bf16.msrb.mxu3 %v1828_v18 }
 0x171   :  { %482 = vmatpush.bf16.msrb.mxu3 %v1827_v22 }
 0x175   :  { %1626 = vmatmul.msk.bf16.vlgmr.msrb.gmra.mxu2 %vm223_vm2, %v2110_v3  ;;  %509 = vmatpush.bf16.msra.mxu3 %v1830_v26 }
 0x176   :  { %677 = vmatpush.bf16.msrb.mxu2 %v1842_v28 }
 0x179   :  { %510 = vmatpush.bf16.msra.mxu3 %v1829_v29 }
 0x17a   :  { %678 = vmatpush.bf16.msrb.mxu2 %v1841_v31 }
 0x1b8   :  { %v2116_v4 = vpop.f32.mrf.mxu2 }
 0x1c0   :  { %v2118_v5 = vpop.f32.mrf.mxu2 }
 0x1c8   :  { %v2120_v6 = vpop.f32.mrf.mxu2 }
 0x1d0   :  { %v2122_v7 = vpop.f32.mrf.mxu2 }
 0x1d8   :  { %v2124_v8 = vpop.f32.mrf.mxu2 }
 0x1e0   :  { %v2126_v9 = vpop.f32.mrf.mxu2 }
 0x1e8   :  { %v2128_v10 = vpop.f32.mrf.mxu2 }
 0x1ef   :  { %v394_v12 = vpop.f32.mrf.mxu3 }
 0x1f0   :  { %v2130_v11 = vpop.f32.mrf.mxu2 }
 0x1f7   :  { %v396_v14 = vpop.f32.mrf.mxu3 }
 0x1f8   :  { %v375_v13 = vpop.f32.mrf.mxu2 }
 0x200   :  { %v377_v16 = vpop.f32.mrf.mxu2 }
 0x201   :  { %v1870_v17 = vpack.i.bf16 %v377_v16, %v396_v14 }
 0x203   :  { %1871 = vrot.lane.b32.xlu0 %v1870_v17, %s1963_s12 }
 0x275   :  { %v1872_v32 = vpop.permute.xlu0 %1871 }
 0x276   :  { %v1874_v33 = vunpack.i.h.bf16 %v1872_v32  ;;  %v1873_v34 = vunpack.i.l.bf16 %v1872_v32 }
 0x278   :  { %v384_v35 = vsel %vm316_vm3, %v375_v13, %v1874_v33  ;;  %v403_v36 = vsel %vm316_vm3, %v394_v12, %v1873_v34 }
 0x279   :  { %v427_v37 = vperm.slane %v403_v36, 0  ;;  %v421_v38 = vrot.slane %v403_v36, 2  ;;  %v422_v15 = vrot.slane %v403_v36, 3  ;;  %v423_v39 = vrot.slane %v403_v36, 4 }
 0x27a   :  { %v406_v41 = vrot.slane %v384_v35, 2  ;;  %v407_v43 = vrot.slane %v384_v35, 3  ;;  %v408_v47 = vrot.slane %v384_v35, 4  ;;  %v420_v56 = vrot.slane %v403_v36, 1 }
 0x27b   :  { %v444_v40 = vsel %vm443_vm4, %v384_v35, %v427_v37  ;;  %v429_v42 = vperm.slane %v421_v38, 0  ;;  %v430_v46 = vperm.slane %v422_v15, 0  ;;  %v431_v48 = vperm.slane %v423_v39, 0 }
 0x27c   :  { %v452_v45 = vpack.c.bf16 %v444_v40, %v444_v40  ;;  %v425_v57 = vrot.slane %v403_v36, 6  ;;  %v426_v58 = vrot.slane %v403_v36, 7  ;;  %v428_v59 = vperm.slane %v420_v56, 0 }
 0x27d   :  { %v446_v49 = vsel %vm443_vm4, %v406_v41, %v429_v42  ;;  %v447_v51 = vsel %vm443_vm4, %v407_v43, %v430_v46  ;;  %v448_v52 = vsel %vm443_vm4, %v408_v47, %v431_v48  ;;  %v405_v60 = vrot.slane %v384_v35, 1 }
 0x27e   :  { %1636 = vmatmul.msk.bf16.vlgmr.msrb.gmra.mxu3 %vm223_vm2, %v452_v45  ;;  %v454_v50 = vpack.c.bf16 %v446_v49, %v446_v49  ;;  %v455_v53 = vpack.c.bf16 %v447_v51, %v447_v51  ;;  %v456_v54 = vpack.c.bf16 %v448_v52, %v448_v52  ;;  %v433_v61 = vperm.slane %v425_v57, 0 }
 0x27f   :  { %621 = vmatpush.bf16.msrb.mxu3 %v1838_v44  ;;  %v434_v62 = vperm.slane %v426_v58, 0  ;;  %v445_v63 = vsel %vm443_vm4, %v405_v60, %v428_v59  ;;  %v410_v0 = vrot.slane %v384_v35, 6  ;;  %v411_v1 = vrot.slane %v384_v35, 7 }
 0x280   :  { %1654 = vmatmul.msk.bf16.vlgmr.msra.gmra.mxu0 %vm223_vm2, %v454_v50  ;;  %1663 = vmatmul.msk.bf16.vlgmr.msra.gmra.mxu2 %vm223_vm2, %v455_v53  ;;  %v453_v12 = vpack.c.bf16 %v445_v63, %v445_v63  ;;  %v424_v17 = vrot.slane %v403_v36, 5  ;;  %v409_v19 = vrot.slane %v384_v35, 5 }
 0x281   :  { %1672 = vmatmul.msk.bf16.vlgmr.msrb.gmra.mxu1 %vm223_vm2, %v456_v54  ;;  %v450_v2 = vsel %vm443_vm4, %v410_v0, %v433_v61  ;;  %v451_v13 = vsel %vm443_vm4, %v411_v1, %v434_v62 }
 0x282   :  { %v458_v14 = vpack.c.bf16 %v450_v2, %v450_v2  ;;  %v459_v16 = vpack.c.bf16 %v451_v13, %v451_v13  ;;  %v432_v18 = vperm.slane %v424_v17, 0  ;;  %v1882_v17 = vld [vmem:[%s2353_s7] ss:$0 sm:$0xff] }
 0x283   :  { %622 = vmatpush.bf16.msrb.mxu3 %v1837_v55 }
 0x284   :  { %v449_v20 = vsel %vm443_vm4, %v409_v19, %v432_v18 }
 0x285   :  { %v457_v21 = vpack.c.bf16 %v449_v20, %v449_v20 }
 0x28e   :  { %1645 = vmatmul.msk.bf16.vlgmr.msra.gmra.mxu3 %vm223_vm2, %v453_v12 }
 0x290   :  { %1690 = vmatmul.msk.bf16.vlgmr.msrb.gmra.mxu0 %vm223_vm2, %v458_v14  ;;  %1699 = vmatmul.msk.bf16.vlgmr.msrb.gmra.mxu2 %vm223_vm2, %v459_v16  ;;  %v2170_v14 = vld [vmem:[%s2359_s13] sm:$0xff]  ;;  %v2179_v16 = vld [vmem:[%s2359_s13 + $0x8] sm:$0xff] }
 0x29e   :  { %1681 = vmatmul.msk.bf16.vlgmr.msrb.gmra.mxu3 %vm223_vm2, %v457_v21 }
 0x2fd   :  { %v540_v22 = vpop.f32.mrf.mxu0 }
 0x2fe   :  { %v596_v23 = vpop.f32.mrf.mxu1  ;;  %v695_v15 = vrot.slane %v540_v22, 6  ;;  %v755_v39 = vrot.slane %v540_v22, 7 }
 0x2ff   :  { %v701_v47 = vrot.slane %v596_v23, 4  ;;  %v759_v48 = vrot.slane %v596_v23, 5 }
 0x301   :  { %v484_v24 = vpop.f32.mrf.mxu3 }
 0x302   :  { %v753_v35 = vrot.slane %v484_v24, 1 }
 0x303   :  { %v568_v25 = vpop.f32.mrf.mxu2 }
 0x304   :  { %v698_v43 = vrot.slane %v568_v25, 5  ;;  %v757_v44 = vrot.slane %v568_v25, 6  ;;  %v1843_v25 = vld [vmem:[%s2351_s5 + $0x8] sm:$0xff] }
 0x305   :  { %v542_v26 = vpop.f32.mrf.mxu0  ;;  %949 = vmatpush.bf16.msra.mxu0 %v1843_v25 }
 0x306   :  { %v598_v27 = vpop.f32.mrf.mxu1 }
 0x309   :  { %v486_v28 = vpop.f32.mrf.mxu3 }
 0x30b   :  { %v570_v29 = vpop.f32.mrf.mxu2 }
 0x30d   :  { %v652_v30 = vpop.f32.mrf.mxu0 }
 0x30e   :  { %v707_v52 = vrot.slane %v652_v30, 2  ;;  %v763_v53 = vrot.slane %v652_v30, 3 }
 0x311   :  { %v512_v31 = vpop.f32.mrf.mxu3 }
 0x312   :  { %v692_v34 = vrot.slane %v512_v31, 7  ;;  %v754_v38 = vsel %vm693_vm5, %v512_v31, %v753_v35 }
 0x313   :  { %v680_v32 = vpop.f32.mrf.mxu2  ;;  %v756_v42 = vsel %vm696_vm6, %v755_v39, %v754_v38 }
 0x314   :  { %v694_v37 = vsel %vm693_vm5, %v692_v34, %v484_v24  ;;  %v758_v45 = vsel %vm699_vm7, %v757_v44, %v756_v42  ;;  %v710_v56 = vrot.slane %v680_v32, 1  ;;  %v765_v57 = vrot.slane %v680_v32, 2 }
 0x315   :  { %v654_v33 = vpop.f32.mrf.mxu0  ;;  %v697_v41 = vsel %vm696_vm6, %v695_v15, %v694_v37  ;;  %v760_v54 = vsel %vm702_vm8, %v759_v48, %v758_v45 }
 0x316   :  { %v700_v46 = vsel %vm699_vm7, %v698_v43, %v697_v41 }
 0x317   :  { %v703_v55 = vsel %vm702_vm8, %v701_v47, %v700_v46 }
 0x319   :  { %v514_v36 = vpop.f32.mrf.mxu3 }
 0x31b   :  { %v682_v40 = vpop.f32.mrf.mxu2 }
 0x321   :  { %v624_v49 = vpop.f32.mrf.mxu3 }
 0x322   :  { %v704_v50 = vrot.slane %v624_v49, 3  ;;  %v761_v51 = vrot.slane %v624_v49, 4 }
 0x324   :  { %v762_v58 = vsel %vm705_vm9, %v761_v51, %v760_v54  ;;  %v706_v59 = vsel %vm705_vm9, %v704_v50, %v703_v55 }
 0x325   :  { %v764_v60 = vsel %vm708_vm10, %v763_v53, %v762_v58  ;;  %v709_v61 = vsel %vm708_vm10, %v707_v52, %v706_v59 }
 0x326   :  { %v766_v62 = vsel %vm711_vm11, %v765_v57, %v764_v60  ;;  %v712_v63 = vsel %vm711_vm11, %v710_v56, %v709_v61 }
 0x327   :  { %768 = vrot.lane.b32.xlu1 %v766_v62, %s1964_s27  ;;  %714 = vrot.lane.b32.xlu0 %v712_v63, %s1964_s27 }
 0x329   :  { %v626_v0 = vpop.f32.mrf.mxu3 }
 0x399   :  { %v769_v1 = vpop.permute.xlu1 %768  ;;  %v715_v2 = vpop.permute.xlu0 %714 }
 0x39a   :  { %v771_v12 = vpack.c.bf16 %v769_v1, %v766_v62  ;;  %v717_v13 = vpack.c.bf16 %v715_v2, %v712_v63 }
 0x39c   :  { %741 = vmatpush.bf16.msra.mxu1 %v717_v13  ;;  %779 = vmatpush.bf16.msra.mxu3 %v771_v12 }
 0x39f   :  { %1708 = vmatmul.msk.bf16.vlgmr.msra.gmra.mxu1 %vm316_vm3, %v2170_v14  ;;  %1710 = vmatmul.msk.bf16.vlgmr.msra.gmra.mxu3 %vm316_vm3, %v2170_v14 }
 0x3af   :  { %1709 = vmatmul.msk.bf16.gmra.mxu1 %vm316_vm3, %v2179_v16  ;;  %1711 = vmatmul.msk.bf16.gmra.mxu3 %vm316_vm3, %v2179_v16 }
 0x41c   :  { %v743_v18 = vpop.f32.mrf.mxu1 }
 0x41d   :  { %v794_v19 = vadd.f32 %v1882_v17, %v743_v18 }
 0x41f   :  { %v802_v20 = vadd.f32 %v794_v19, %v2116_v4 }
 0x421   :  { %v810_v21 = vmul.f32 %v802_v20, %v802_v20 }
 0x422   :  { %v781_v22 = vpop.f32.mrf.mxu3 }
 0x423   :  { %v818_v23 = vmul.f32 %v810_v21, %v802_v20  ;;  %v798_v33 = vadd.f32 %v1882_v17, %v781_v22 }
 0x424   :  { %v745_v24 = vpop.f32.mrf.mxu1 }
 0x425   :  { %v826_v26 = vmul.f32 0.044715, %v818_v23  ;;  %v795_v27 = vadd.f32 %v1882_v17, %v745_v24  ;;  %v2197_v15 = vadd.f32 %v798_v33, %v2124_v8 }
 0x427   :  { %v834_v28 = vadd.f32 %v826_v26, %v802_v20  ;;  %v803_v29 = vadd.f32 %v795_v27, %v2118_v5 }
 0x429   :  { %v842_v30 = vmul.f32 0.7978846, %v834_v28  ;;  %v811_v31 = vmul.f32 %v803_v29, %v803_v29 }
 0x42a   :  { %v783_v32 = vpop.f32.mrf.mxu3 }
 0x42b   :  { %v819_v34 = vmul.f32 %v811_v31, %v803_v29  ;;  %v799_v4 = vadd.f32 %v1882_v17, %v783_v32  ;;  %1902 = vtanh.f32 %v842_v30 }
 0x42c   :  { %v748_v35 = vpop.f32.mrf.mxu1 }
 0x42d   :  { %v827_v36 = vmul.f32 0.044715, %v819_v34  ;;  %v2194_v37 = vadd.f32 %v799_v4, %v2126_v9  ;;  %v796_v38 = vadd.f32 %v1882_v17, %v748_v35  ;;  %v814_v9 = vmul.f32 %v2197_v15, %v2197_v15 }
 0x42f   :  { %v835_v39 = vadd.f32 %v827_v36, %v803_v29  ;;  %v2200_v40 = vadd.f32 %v796_v38, %v2120_v6  ;;  %v815_v5 = vmul.f32 %v2194_v37, %v2194_v37  ;;  %v822_v51 = vmul.f32 %v814_v9, %v2197_v15 }
 0x431   :  { %v843_v41 = vmul.f32 0.7978846, %v835_v39  ;;  %v812_v42 = vmul.f32 %v2200_v40, %v2200_v40  ;;  %v1903_v44 = vpop.eup %1902  ;;  %v823_v46 = vmul.f32 %v815_v5, %v2194_v37  ;;  %v830_v62 = vmul.f32 0.044715, %v822_v51 }
 0x432   :  { %v786_v43 = vpop.f32.mrf.mxu3  ;;  %v858_v50 = vadd.f32 1.0, %v1903_v44 }
 0x433   :  { %1904 = vtanh.f32 %v843_v41  ;;  %v820_v8 = vmul.f32 %v812_v42, %v2200_v40  ;;  %v800_v45 = vadd.f32 %v1882_v17, %v786_v43  ;;  %v831_v55 = vmul.f32 0.044715, %v823_v46 }
 0x434   :  { %v750_v6 = vpop.f32.mrf.mxu1  ;;  %v866_v60 = vmul.f32 0.5, %v858_v50  ;;  %v838_v22 = vadd.f32 %v830_v62, %v2197_v15  ;;  %v1853_v62 = vld [vmem:[#allocation2 + $0xc8] sm:$0xff] }
 0x435   :  { %v828_v47 = vmul.f32 0.044715, %v820_v8  ;;  %v2211_v48 = vadd.f32 %v800_v45, %v2128_v10  ;;  %v797_v49 = vadd.f32 %v1882_v17, %v750_v6  ;;  %v839_v12 = vadd.f32 %v831_v55, %v2194_v37 }
 0x436   :  { %v874_v19 = vmul.f32 %v866_v60, %v802_v20  ;;  %v846_v32 = vmul.f32 0.7978846, %v838_v22  ;;  %v1844_v60 = vld [vmem:[#allocation2 + $0x80] sm:$0xff] }
 0x437   :  { %v836_v52 = vadd.f32 %v828_v47, %v2200_v40  ;;  %v816_v53 = vmul.f32 %v2211_v48, %v2211_v48  ;;  %v805_v54 = vadd.f32 %v797_v49, %v2122_v7 }
 0x439   :  { %v1905_v56 = vpop.eup %1904  ;;  %v824_v57 = vmul.f32 %v816_v53, %v2211_v48  ;;  %v813_v58 = vmul.f32 %v805_v54, %v805_v54  ;;  %v844_v59 = vmul.f32 0.7978846, %v836_v52 }
 0x43a   :  { %v859_v10 = vadd.f32 1.0, %v1905_v56  ;;  %v788_v61 = vpop.f32.mrf.mxu3 }
 0x43b   :  { %v832_v63 = vmul.f32 0.044715, %v824_v57  ;;  %v821_v0 = vmul.f32 %v813_v58, %v805_v54  ;;  %v801_v1 = vadd.f32 %v1882_v17, %v788_v61  ;;  %1906 = vtanh.f32 %v844_v59  ;;  %v1847_v58 = vld [vmem:[#allocation2 + $0x98] sm:$0xff]  ;;  %v1849_v59 = vld [vmem:[#allocation2 + $0xa8] sm:$0xff]  ;;  %v1848_v61 = vld [vmem:[#allocation2 + $0xa0] sm:$0xff] }
 0x43c   :  { %v867_v2 = vmul.f32 0.5, %v859_v10  ;;  %v847_v17 = vmul.f32 0.7978846, %v839_v12  ;;  %1113 = vmatpush.bf16.msrb.mxu3 %v1847_v58  ;;  %v1846_v10 = vld [vmem:[#allocation2 + $0x90] sm:$0xff] }
 0x43d   :  { %v840_v13 = vadd.f32 %v832_v63, %v2211_v48  ;;  %v829_v18 = vmul.f32 0.044715, %v821_v0  ;;  %v809_v7 = vadd.f32 %v801_v1, %v2130_v11  ;;  %v1855_v63 = vld [vmem:[#allocation2 + $0xd8] sm:$0xff]  ;;  %v1850_v0 = vld [vmem:[#allocation2 + $0xb0] sm:$0xff]  ;;  %v1852_v1 = vld [vmem:[#allocation2 + $0xc0] sm:$0xff] }
 0x43e   :  { %v875_v21 = vmul.f32 %v867_v2, %v803_v29  ;;  %v1854_v2 = vld [vmem:[#allocation2 + $0xd0] sm:$0xff] }
 0x43f   :  { %v848_v23 = vmul.f32 0.7978846, %v840_v13  ;;  %v837_v24 = vadd.f32 %v829_v18, %v805_v54  ;;  %v817_v25 = vmul.f32 %v809_v7, %v809_v7 }
 0x440   :  { %v920_v26 = vpack.c.bf16 %v875_v21, %v874_v19  ;;  %1114 = vmatpush.bf16.msrb.mxu3 %v1846_v10 }
 0x441   :  { %v825_v27 = vmul.f32 %v817_v25, %v809_v7  ;;  %v845_v28 = vmul.f32 0.7978846, %v837_v24  ;;  %1908 = vtanh.f32 %v848_v23  ;;  %v1907_v30 = vpop.eup %1906 }
 0x442   :  { %1719 = vmatmul.msk.bf16.vlgmr.msra.gmra.mxu0 %vm316_vm3, %v920_v26  ;;  %v860_v20 = vadd.f32 1.0, %v1907_v30 }
 0x443   :  { %v833_v31 = vmul.f32 0.044715, %v825_v27  ;;  %1910 = vtanh.f32 %v845_v28  ;;  %v1857_v27 = vld [vmem:[#allocation2 + $0xe8] sm:$0xff] }
 0x444   :  { %1912 = vtanh.f32 %v847_v17  ;;  %v868_v35 = vmul.f32 0.5, %v860_v20  ;;  %1197 = vmatpush.bf16.msra.mxu3 %v1853_v62 }
 0x445   :  { %v841_v11 = vadd.f32 %v833_v31, %v809_v7  ;;  %1914 = vtanh.f32 %v846_v32  ;;  %v1859_v32 = vld [vmem:[#allocation2 + $0xf8] sm:$0xff] }
 0x446   :  { %v876_v41 = vmul.f32 %v868_v35, %v2200_v40 }
 0x447   :  { %v849_v29 = vmul.f32 0.7978846, %v841_v11  ;;  %v1909_v33 = vpop.eup %1908 }
 0x448   :  { %v864_v39 = vadd.f32 1.0, %v1909_v33  ;;  %1198 = vmatpush.bf16.msra.mxu3 %v1852_v1  ;;  %v1856_v33 = vld [vmem:[#allocation2 + $0xe0] sm:$0xff] }
 0x449   :  { %v1911_v34 = vpop.eup %1910  ;;  %1916 = vtanh.f32 %v849_v29 }
 0x44a   :  { %v861_v4 = vadd.f32 1.0, %v1911_v34  ;;  %v1913_v36 = vpop.eup %1912  ;;  %v872_v45 = vmul.f32 0.5, %v864_v39 }
 0x44b   :  { %v1915_v5 = vpop.eup %1914  ;;  %v863_v43 = vadd.f32 1.0, %v1913_v36 }
 0x44c   :  { %v869_v38 = vmul.f32 0.5, %v861_v4  ;;  %v862_v46 = vadd.f32 1.0, %v1915_v5  ;;  %v880_v49 = vmul.f32 %v872_v45, %v2211_v48  ;;  %v1858_v4 = vld [vmem:[#allocation2 + $0xf0] sm:$0xff] }
 0x44d   :  { %v871_v47 = vmul.f32 0.5, %v863_v43 }
 0x44e   :  { %v877_v42 = vmul.f32 %v869_v38, %v805_v54  ;;  %v870_v51 = vmul.f32 0.5, %v862_v46 }
 0x44f   :  { %v1917_v44 = vpop.eup %1916  ;;  %v879_v40 = vmul.f32 %v871_v47, %v2194_v37 }
 0x450   :  { %v921_v9 = vpack.c.bf16 %v877_v42, %v876_v41  ;;  %v865_v8 = vadd.f32 1.0, %v1917_v44  ;;  %v878_v53 = vmul.f32 %v870_v51, %v2197_v15  ;;  %v1845_v15 = vld [vmem:[#allocation2 + $0x88] sm:$0xff] }
 0x451   :  { %1085 = vmatpush.bf16.msrb.mxu1 %v1845_v15 }
 0x452   :  { %1720 = vmatmul.msk.bf16.gmra.mxu0 %vm316_vm3, %v921_v9  ;;  %977 = vmatpush.bf16.msra.mxu2 %v921_v9  ;;  %v873_v6 = vmul.f32 0.5, %v865_v8  ;;  %v922_v54 = vpack.c.bf16 %v879_v40, %v878_v53 }
 0x454   :  { %v881_v50 = vmul.f32 %v873_v6, %v809_v7 }
 0x455   :  { %1086 = vmatpush.bf16.msrb.mxu1 %v1844_v60 }
 0x456   :  { %978 = vmatpush.bf16.msra.mxu2 %v920_v26  ;;  %v923_v52 = vpack.c.bf16 %v881_v50, %v880_v49 }
 0x459   :  { %1723 = vmatmul.msk.bf16.vlgmr.msra.gmra.mxu2 %vm223_vm2, %v2110_v3 }
 0x45a   :  { %996 = vmatpush.bf16.msrb.mxu2 %v923_v52 }
 0x45e   :  { %997 = vmatpush.bf16.msrb.mxu2 %v922_v54 }
 0x462   :  { %1721 = vmatmul.msk.bf16.gmra.mxu0 %vm316_vm3, %v922_v54  ;;  %1141 = vmatpush.bf16.msra.mxu2 %v1849_v59 }
 0x466   :  { %1142 = vmatpush.bf16.msra.mxu2 %v1848_v61 }
 0x469   :  { %1724 = vmatmul.msk.bf16.vlgmr.msrb.gmra.mxu2 %vm223_vm2, %v2110_v3  ;;  %v1851_v3 = vld [vmem:[#allocation2 + $0xb8] sm:$0xff] }
 0x46a   :  { %1169 = vmatpush.bf16.msra.mxu1 %v1851_v3  ;;  %1225 = vmatpush.bf16.msrb.mxu2 %v1855_v63 }
 0x46e   :  { %1170 = vmatpush.bf16.msra.mxu1 %v1850_v0  ;;  %1226 = vmatpush.bf16.msrb.mxu2 %v1854_v2 }
 0x472   :  { %1722 = vmatmul.msk.bf16.gmra.mxu0 %vm316_vm3, %v923_v52 }
 0x4dc   :  { %v980_v48 = vpop.f32.mrf.mxu2 }
 0x4e4   :  { %v982_v55 = vpop.f32.mrf.mxu2 }
 0x4ec   :  { %v999_v56 = vpop.f32.mrf.mxu2 }
 0x4f4   :  { %v1001_v57 = vpop.f32.mrf.mxu2 }
 0x4f5   :  { %v1875_v37 = vpack.i.bf16 %v982_v55, %v1001_v57 }
 0x4f7   :  { %1876 = vrot.lane.b32.xlu1 %v1875_v37, %s1963_s12 }
 0x569   :  { %v1877_v12 = vpop.permute.xlu1 %1876 }
 0x56a   :  { %v1879_v13 = vunpack.i.h.bf16 %v1877_v12  ;;  %v1878_v18 = vunpack.i.l.bf16 %v1877_v12 }
 0x56c   :  { %v989_v7 = vsel %vm316_vm3, %v980_v48, %v1879_v13  ;;  %v1008_v19 = vsel %vm316_vm3, %v999_v56, %v1878_v18 }
 0x56d   :  { %v1032_v21 = vperm.slane %v1008_v19, 0  ;;  %v1025_v22 = vrot.slane %v1008_v19, 1  ;;  %v1026_v23 = vrot.slane %v1008_v19, 2  ;;  %v1010_v25 = vrot.slane %v989_v7, 1 }
 0x56e   :  { %v1011_v17 = vrot.slane %v989_v7, 2  ;;  %v1027_v34 = vrot.slane %v1008_v19, 3  ;;  %v1028_v35 = vrot.slane %v1008_v19, 4  ;;  %v1029_v36 = vrot.slane %v1008_v19, 5 }
 0x56f   :  { %v1048_v24 = vsel %vm443_vm4, %v989_v7, %v1032_v21  ;;  %v1033_v26 = vperm.slane %v1025_v22, 0  ;;  %v1034_v30 = vperm.slane %v1026_v23, 0  ;;  %v1012_v39 = vrot.slane %v989_v7, 3 }
 0x570   :  { %v1056_v28 = vpack.c.bf16 %v1048_v24, %v1048_v24  ;;  %v1035_v38 = vperm.slane %v1027_v34, 0  ;;  %v1036_v5 = vperm.slane %v1028_v35, 0  ;;  %v1037_v41 = vperm.slane %v1029_v36, 0 }
 0x571   :  { %v1049_v31 = vsel %vm443_vm4, %v1010_v25, %v1033_v26  ;;  %v1050_v20 = vsel %vm443_vm4, %v1011_v17, %v1034_v30  ;;  %v1013_v43 = vrot.slane %v989_v7, 4  ;;  %v1014_v44 = vrot.slane %v989_v7, 5 }
 0x572   :  { %1733 = vmatmul.msk.bf16.vlgmr.msrb.gmra.mxu1 %vm223_vm2, %v1056_v28  ;;  %v1057_v11 = vpack.c.bf16 %v1049_v31, %v1049_v31  ;;  %v1058_v29 = vpack.c.bf16 %v1050_v20, %v1050_v20  ;;  %v1051_v42 = vsel %vm443_vm4, %v1012_v39, %v1035_v38  ;;  %v1030_v47 = vrot.slane %v1008_v19, 6 }
 0x573   :  { %1253 = vmatpush.bf16.msrb.mxu1 %v1857_v27  ;;  %v1052_v9 = vsel %vm443_vm4, %v1013_v43, %v1036_v5  ;;  %v1059_v8 = vpack.c.bf16 %v1051_v42, %v1051_v42  ;;  %v1053_v45 = vsel %vm443_vm4, %v1014_v44, %v1037_v41  ;;  %v1031_v49 = vrot.slane %v1008_v19, 7 }
 0x574   :  { %1742 = vmatmul.msk.bf16.vlgmr.msrb.gmra.mxu3 %vm223_vm2, %v1057_v11  ;;  %1751 = vmatmul.msk.bf16.vlgmr.msra.gmra.mxu2 %vm223_vm2, %v1058_v29  ;;  %v1060_v46 = vpack.c.bf16 %v1052_v9, %v1052_v9  ;;  %v1061_v6 = vpack.c.bf16 %v1053_v45, %v1053_v45  ;;  %v1038_v50 = vperm.slane %v1030_v47, 0  ;;  %v1015_v51 = vrot.slane %v989_v7, 6 }
 0x575   :  { %1281 = vmatpush.bf16.msrb.mxu3 %v1859_v32  ;;  %v1039_v52 = vperm.slane %v1031_v49, 0  ;;  %v1016_v53 = vrot.slane %v989_v7, 7 }
 0x576   :  { %v1054_v40 = vsel %vm443_vm4, %v1015_v51, %v1038_v50  ;;  %v1860_v50 = vld [vmem:[%s2354_s8] sm:$0xff] }
 0x577   :  { %1254 = vmatpush.bf16.msrb.mxu1 %v1856_v33  ;;  %v1055_v54 = vsel %vm443_vm4, %v1016_v53, %v1039_v52  ;;  %v1062_v48 = vpack.c.bf16 %v1054_v40, %v1054_v40  ;;  %v1883_v40 = vld [vmem:[%s2353_s7 + $0x1] ss:$0 sm:$0xff] }
 0x578   :  { %v1063_v55 = vpack.c.bf16 %v1055_v54, %v1055_v54 }
 0x579   :  { %1282 = vmatpush.bf16.msrb.mxu3 %v1858_v4 }
 0x582   :  { %1760 = vmatmul.msk.bf16.vlgmr.msra.gmra.mxu1 %vm223_vm2, %v1059_v8  ;;  %v951_v8 = vpop.f32.mrf.mxu0 }
 0x583   :  { %1426 = vmatpush.bf16.msra.mxu1 %v1860_v50 }
 0x584   :  { %1769 = vmatmul.msk.bf16.vlgmr.msra.gmra.mxu3 %vm223_vm2, %v1060_v46  ;;  %1778 = vmatmul.msk.bf16.vlgmr.msrb.gmra.mxu2 %vm223_vm2, %v1061_v6 }
 0x58a   :  { %v953_v45 = vpop.f32.mrf.mxu0 }
 0x592   :  { %1787 = vmatmul.msk.bf16.vlgmr.msrb.gmra.mxu1 %vm223_vm2, %v1062_v48  ;;  %v956_v46 = vpop.f32.mrf.mxu0 }
 0x594   :  { %1796 = vmatmul.msk.bf16.vlgmr.msrb.gmra.mxu3 %vm223_vm2, %v1063_v55 }
 0x59a   :  { %v958_v6 = vpop.f32.mrf.mxu0 }
 0x5a2   :  { %v961_v47 = vpop.f32.mrf.mxu0 }
 0x5aa   :  { %v963_v49 = vpop.f32.mrf.mxu0 }
 0x5b2   :  { %v966_v51 = vpop.f32.mrf.mxu0 }
 0x5ba   :  { %v968_v52 = vpop.f32.mrf.mxu0 }
 0x5ef   :  { %v1088_v56 = vpop.f32.mrf.mxu1 }
 0x5f0   :  { %v1334_v24 = vrot.slane %v1088_v56, 1 }
 0x5f7   :  { %v1090_v57 = vpop.f32.mrf.mxu1  ;;  %v1116_v37 = vpop.f32.mrf.mxu3 }
 0x5f8   :  { %v1144_v15 = vpop.f32.mrf.mxu2  ;;  %v1296_v62 = vrot.slane %v1116_v37, 7  ;;  %v1335_v28 = vsel %vm693_vm5, %v1116_v37, %v1334_v24 }
 0x5f9   :  { %v1298_v63 = vrot.slane %v1144_v15, 6  ;;  %v1336_v25 = vrot.slane %v1144_v15, 7 }
 0x5fa   :  { %v1297_v2 = vsel %vm693_vm5, %v1296_v62, %v1088_v56 }
 0x5fb   :  { %v1299_v7 = vsel %vm696_vm6, %v1298_v63, %v1297_v2  ;;  %v1337_v29 = vsel %vm696_vm6, %v1336_v25, %v1335_v28 }
 0x5ff   :  { %v1118_v58 = vpop.f32.mrf.mxu3  ;;  %v1172_v59 = vpop.f32.mrf.mxu1 }
 0x600   :  { %v1146_v60 = vpop.f32.mrf.mxu2  ;;  %v1300_v12 = vrot.slane %v1172_v59, 5  ;;  %v1338_v17 = vrot.slane %v1172_v59, 6 }
 0x602   :  { %v1301_v19 = vsel %vm699_vm7, %v1300_v12, %v1299_v7  ;;  %v1339_v33 = vsel %vm699_vm7, %v1338_v17, %v1337_v29  ;;  %v1861_v17 = vld [vmem:[%s2356_s10] sm:$0xff] }
 0x607   :  { %v1174_v10 = vpop.f32.mrf.mxu1  ;;  %v1200_v61 = vpop.f32.mrf.mxu3 }
 0x608   :  { %v1228_v3 = vpop.f32.mrf.mxu2  ;;  %v1302_v18 = vrot.slane %v1200_v61, 4  ;;  %v1340_v32 = vrot.slane %v1200_v61, 5 }
 0x609   :  { %v1304_v21 = vrot.slane %v1228_v3, 3  ;;  %v1342_v34 = vrot.slane %v1228_v3, 4 }
 0x60a   :  { %v1303_v22 = vsel %vm702_vm8, %v1302_v18, %v1301_v19  ;;  %v1341_v4 = vsel %vm702_vm8, %v1340_v32, %v1339_v33 }
 0x60b   :  { %v1305_v31 = vsel %vm705_vm9, %v1304_v21, %v1303_v22  ;;  %v1343_v39 = vsel %vm705_vm9, %v1342_v34, %v1341_v4 }
 0x60f   :  { %v1202_v0 = vpop.f32.mrf.mxu3  ;;  %v1256_v1 = vpop.f32.mrf.mxu1 }
 0x610   :  { %v1230_v13 = vpop.f32.mrf.mxu2  ;;  %v1306_v23 = vrot.slane %v1256_v1, 2  ;;  %v1344_v35 = vrot.slane %v1256_v1, 3 }
 0x612   :  { %v1307_v11 = vsel %vm708_vm10, %v1306_v23, %v1305_v31  ;;  %v1345_v5 = vsel %vm708_vm10, %v1344_v35, %v1343_v39  ;;  %v2291_v23 = vld [vmem:[%s2355_s9] ss:$0 sm:$0xff] }
 0x617   :  { %v1258_v26 = vpop.f32.mrf.mxu1  ;;  %v1284_v27 = vpop.f32.mrf.mxu3 }
 0x618   :  { %v1308_v30 = vrot.slane %v1284_v27, 1  ;;  %v1346_v36 = vrot.slane %v1284_v27, 2  ;;  %v1862_v26 = vld [vmem:[%s2356_s10 + $0x8] sm:$0xff] }
 0x619   :  { %1562 = vmatpush.bf16.msra.mxu3 %v1862_v26 }
 0x61a   :  { %v1309_v20 = vsel %vm711_vm11, %v1308_v30, %v1307_v11  ;;  %v1347_v41 = vsel %vm711_vm11, %v1346_v36, %v1345_v5 }
 0x61b   :  { %1311 = vrot.lane.b32.xlu2 %v1309_v20, %s1964_s27 }
 0x61d   :  { %1563 = vmatpush.bf16.msra.mxu3 %v1861_v17 }
 0x61f   :  { %v1286_v38 = vpop.f32.mrf.mxu3 }
 0x623   :  { %1349 = vrot.lane.b32.xlu2 %v1347_v41, %s1964_s27 }
 0x675   :  { %v1312_v42 = vpop.permute.xlu2 %1311 }
 0x676   :  { %v1314_v43 = vpack.c.bf16 %v1312_v42, %v1309_v20 }
 0x678   :  { %1322 = vmatpush.bf16.msrb.mxu0 %v1314_v43 }
 0x67b   :  { %1797 = vmatmul.msk.bf16.vlgmr.msrb.gmra.mxu0 %vm316_vm3, %v2170_v14 }
 0x67d   :  { %v1350_v44 = vpop.permute.xlu2 %1349 }
 0x67e   :  { %v1352_v9 = vpack.c.bf16 %v1350_v44, %v1347_v41 }
 0x680   :  { %1360 = vmatpush.bf16.msra.mxu2 %v1352_v9 }
 0x683   :  { %1799 = vmatmul.msk.bf16.vlgmr.msra.gmra.mxu2 %vm316_vm3, %v2170_v14 }
 0x68b   :  { %1798 = vmatmul.msk.bf16.gmra.mxu0 %vm316_vm3, %v2179_v16 }
 0x693   :  { %1800 = vmatmul.msk.bf16.gmra.mxu2 %vm316_vm3, %v2179_v16 }
 0x6f8   :  { %v1324_v14 = vpop.f32.mrf.mxu0 }
 0x6f9   :  { %v1375_v53 = vadd.f32 %v1883_v40, %v1324_v14 }
 0x6fb   :  { %v1383_v48 = vadd.f32 %v1375_v53, %v951_v8 }
 0x700   :  { %v1326_v16 = vpop.f32.mrf.mxu0 }
 0x701   :  { %v1376_v54 = vadd.f32 %v1883_v40, %v1326_v16 }
 0x703   :  { %v1384_v55 = vadd.f32 %v1376_v54, %v953_v45 }
 0x705   :  { %v1393_v56 = vpack.c.bf16 %v1384_v55, %v1383_v48 }
 0x706   :  { %v1362_v37 = vpop.f32.mrf.mxu2 }
 0x707   :  { %1805 = vmatmul.msk.bf16.vlgmr.msra.gmra.mxu1 %vm316_vm3, %v1393_v56  ;;  %v1379_v63 = vadd.f32 %v1883_v40, %v1362_v37 }
 0x708   :  { %v1329_v57 = vpop.f32.mrf.mxu0 }
 0x709   :  { %v1377_v15 = vadd.f32 %v1883_v40, %v1329_v57  ;;  %v1387_v2 = vadd.f32 %v1379_v63, %v961_v47 }
 0x70b   :  { %v1385_v60 = vadd.f32 %v1377_v15, %v956_v46 }
 0x70e   :  { %v1364_v3 = vpop.f32.mrf.mxu2 }
 0x70f   :  { %v1380_v62 = vadd.f32 %v1883_v40, %v1364_v3 }
 0x710   :  { %v1331_v58 = vpop.f32.mrf.mxu0 }
 0x711   :  { %v1378_v59 = vadd.f32 %v1883_v40, %v1331_v58  ;;  %v1388_v1 = vadd.f32 %v1380_v62, %v963_v49 }
 0x713   :  { %v1386_v10 = vadd.f32 %v1378_v59, %v958_v6  ;;  %v1395_v12 = vpack.c.bf16 %v1388_v1, %v1387_v2 }
 0x715   :  { %v1394_v61 = vpack.c.bf16 %v1386_v10, %v1385_v60 }
 0x716   :  { %v1367_v0 = vpop.f32.mrf.mxu2 }
 0x717   :  { %1806 = vmatmul.msk.bf16.gmra.mxu1 %vm316_vm3, %v1394_v61  ;;  %v1381_v7 = vadd.f32 %v1883_v40, %v1367_v0 }
 0x719   :  { %v1389_v21 = vadd.f32 %v1381_v7, %v966_v51 }
 0x71e   :  { %v1369_v13 = vpop.f32.mrf.mxu2 }
 0x71f   :  { %v1382_v18 = vadd.f32 %v1883_v40, %v1369_v13 }
 0x721   :  { %v1390_v19 = vadd.f32 %v1382_v18, %v968_v52 }
 0x723   :  { %v1396_v22 = vpack.c.bf16 %v1390_v19, %v1389_v21 }
 0x727   :  { %1807 = vmatmul.msk.bf16.gmra.mxu1 %vm316_vm3, %v1395_v12 }
 0x737   :  { %1808 = vmatmul.msk.bf16.gmra.mxu1 %vm316_vm3, %v1396_v22 }
 0x784   :  { %v1428_v24 = vpop.f32.mrf.mxu1 }
 0x785   :  { %v1429_v25 = vadd.f32 %v2291_v23, %v1428_v24 }
 0x787   :  { %v1448_v27 = vmul.f32 %v1429_v25, %v1429_v25 }
 0x789   :  { %v1456_v28 = vmul.f32 %v1448_v27, %v1429_v25 }
 0x78b   :  { %v1464_v30 = vmul.f32 0.044715, %v1456_v28 }
 0x78c   :  { %v1430_v31 = vpop.f32.mrf.mxu1 }
 0x78d   :  { %v1472_v32 = vadd.f32 %v1464_v30, %v1429_v25  ;;  %v1431_v11 = vadd.f32 %v2291_v23, %v1430_v31 }
 0x78f   :  { %v1480_v20 = vmul.f32 0.7978846, %v1472_v32  ;;  %v1449_v29 = vmul.f32 %v1431_v11, %v1431_v11 }
 0x791   :  { %v1457_v33 = vmul.f32 %v1449_v29, %v1431_v11  ;;  %1918 = vtanh.f32 %v1480_v20 }
 0x793   :  { %v1465_v34 = vmul.f32 0.044715, %v1457_v33 }
 0x794   :  { %v1433_v4 = vpop.f32.mrf.mxu1 }
 0x795   :  { %v1473_v35 = vadd.f32 %v1465_v34, %v1431_v11  ;;  %v1434_v36 = vadd.f32 %v2291_v23, %v1433_v4 }
 0x797   :  { %v1481_v38 = vmul.f32 0.7978846, %v1473_v35  ;;  %v1450_v39 = vmul.f32 %v1434_v36, %v1434_v36  ;;  %v1919_v5 = vpop.eup %1918 }
 0x798   :  { %v1496_v43 = vadd.f32 1.0, %v1919_v5 }
 0x799   :  { %1920 = vtanh.f32 %v1481_v38  ;;  %v1458_v41 = vmul.f32 %v1450_v39, %v1434_v36 }
 0x79a   :  { %v1504_v47 = vmul.f32 0.5, %v1496_v43 }
 0x79b   :  { %v1466_v42 = vmul.f32 0.044715, %v1458_v41 }
 0x79c   :  { %v1435_v44 = vpop.f32.mrf.mxu1  ;;  %v1512_v14 = vmul.f32 %v1504_v47, %v1429_v25 }
 0x79d   :  { %v1474_v9 = vadd.f32 %v1466_v42, %v1434_v36  ;;  %v1436_v8 = vadd.f32 %v2291_v23, %v1435_v44 }
 0x79f   :  { %v1921_v45 = vpop.eup %1920  ;;  %v1482_v46 = vmul.f32 0.7978846, %v1474_v9  ;;  %v1451_v6 = vmul.f32 %v1436_v8, %v1436_v8 }
 0x7a0   :  { %v1497_v49 = vadd.f32 1.0, %v1921_v45 }
 0x7a1   :  { %v1459_v50 = vmul.f32 %v1451_v6, %v1436_v8  ;;  %1922 = vtanh.f32 %v1482_v46 }
 0x7a2   :  { %v1505_v51 = vmul.f32 0.5, %v1497_v49  ;;  %v1885_v49 = vld [vmem:[%s2357_s11] ss:$0 sm:$0xff] }
 0x7a3   :  { %v1467_v52 = vmul.f32 0.044715, %v1459_v50 }
 0x7a4   :  { %v1513_v40 = vmul.f32 %v1505_v51, %v1431_v11  ;;  %v1438_v53 = vpop.f32.mrf.mxu1 }
 0x7a5   :  { %v1475_v16 = vadd.f32 %v1467_v52, %v1436_v8  ;;  %v1439_v54 = vadd.f32 %v2291_v23, %v1438_v53 }
 0x7a6   :  { %v1524_v48 = vpack.c.bf16 %v1513_v40, %v1512_v14 }
 0x7a7   :  { %v1483_v55 = vmul.f32 0.7978846, %v1475_v16  ;;  %v1452_v56 = vmul.f32 %v1439_v54, %v1439_v54  ;;  %v1923_v57 = vpop.eup %1922 }
 0x7a8   :  { %1817 = vmatmul.msk.bf16.vlgmr.msra.gmra.mxu3 %vm223_vm2, %v1524_v48  ;;  %v1498_v59 = vadd.f32 1.0, %v1923_v57 }
 0x7a9   :  { %1924 = vtanh.f32 %v1483_v55  ;;  %v1460_v37 = vmul.f32 %v1452_v56, %v1439_v54 }
 0x7aa   :  { %v1506_v0 = vmul.f32 0.5, %v1498_v59 }
 0x7ab   :  { %v1468_v15 = vmul.f32 0.044715, %v1460_v37 }
 0x7ac   :  { %v1440_v58 = vpop.f32.mrf.mxu1  ;;  %v1514_v18 = vmul.f32 %v1506_v0, %v1434_v36 }
 0x7ad   :  { %v1476_v60 = vadd.f32 %v1468_v15, %v1439_v54  ;;  %v1441_v10 = vadd.f32 %v2291_v23, %v1440_v58 }
 0x7af   :  { %v1925_v61 = vpop.eup %1924  ;;  %v1484_v3 = vmul.f32 0.7978846, %v1476_v60  ;;  %v1453_v62 = vmul.f32 %v1441_v10, %v1441_v10 }
 0x7b0   :  { %v1499_v63 = vadd.f32 1.0, %v1925_v61 }
 0x7b1   :  { %v1461_v1 = vmul.f32 %v1453_v62, %v1441_v10  ;;  %1926 = vtanh.f32 %v1484_v3 }
 0x7b2   :  { %v1507_v2 = vmul.f32 0.5, %v1499_v63 }
 0x7b3   :  { %v1469_v12 = vmul.f32 0.044715, %v1461_v1 }
 0x7b4   :  { %v1443_v13 = vpop.f32.mrf.mxu1  ;;  %v1515_v7 = vmul.f32 %v1507_v2, %v1436_v8 }
 0x7b5   :  { %v1477_v19 = vadd.f32 %v1469_v12, %v1441_v10  ;;  %v1444_v21 = vadd.f32 %v2291_v23, %v1443_v13 }
 0x7b6   :  { %v1525_v22 = vpack.c.bf16 %v1515_v7, %v1514_v18 }
 0x7b7   :  { %v1485_v24 = vmul.f32 0.7978846, %v1477_v19  ;;  %v1454_v25 = vmul.f32 %v1444_v21, %v1444_v21  ;;  %v1927_v26 = vpop.eup %1926 }
 0x7b8   :  { %1818 = vmatmul.msk.bf16.gmra.mxu3 %vm223_vm2, %v1525_v22  ;;  %v1500_v30 = vadd.f32 1.0, %v1927_v26 }
 0x7b9   :  { %1928 = vtanh.f32 %v1485_v24  ;;  %v1462_v27 = vmul.f32 %v1454_v25, %v1444_v21 }
 0x7ba   :  { %v1508_v34 = vmul.f32 0.5, %v1500_v30 }
 0x7bb   :  { %v1470_v28 = vmul.f32 0.044715, %v1462_v27 }
 0x7bc   :  { %v1445_v17 = vpop.f32.mrf.mxu1  ;;  %v1516_v38 = vmul.f32 %v1508_v34, %v1439_v54 }
 0x7bd   :  { %v1478_v31 = vadd.f32 %v1470_v28, %v1444_v21  ;;  %v1446_v32 = vadd.f32 %v2291_v23, %v1445_v17 }
 0x7bf   :  { %v1929_v11 = vpop.eup %1928  ;;  %v1486_v20 = vmul.f32 0.7978846, %v1478_v31  ;;  %v1455_v29 = vmul.f32 %v1446_v32, %v1446_v32 }
 0x7c0   :  { %v1501_v33 = vadd.f32 1.0, %v1929_v11 }
 0x7c1   :  { %v1463_v4 = vmul.f32 %v1455_v29, %v1446_v32  ;;  %1930 = vtanh.f32 %v1486_v20 }
 0x7c2   :  { %v1509_v35 = vmul.f32 0.5, %v1501_v33 }
 0x7c3   :  { %v1471_v36 = vmul.f32 0.044715, %v1463_v4 }
 0x7c4   :  { %v1517_v39 = vmul.f32 %v1509_v35, %v1441_v10 }
 0x7c5   :  { %v1479_v5 = vadd.f32 %v1471_v36, %v1446_v32 }
 0x7c6   :  { %v1526_v41 = vpack.c.bf16 %v1517_v39, %v1516_v38 }
 0x7c7   :  { %v1487_v42 = vmul.f32 0.7978846, %v1479_v5  ;;  %v1931_v43 = vpop.eup %1930 }
 0x7c8   :  { %1819 = vmatmul.msk.bf16.gmra.mxu3 %vm223_vm2, %v1526_v41  ;;  %v1502_v44 = vadd.f32 1.0, %v1931_v43 }
 0x7c9   :  { %1932 = vtanh.f32 %v1487_v42 }
 0x7ca   :  { %v1510_v9 = vmul.f32 0.5, %v1502_v44 }
 0x7cc   :  { %v1518_v46 = vmul.f32 %v1510_v9, %v1444_v21 }
 0x7cf   :  { %v1933_v23 = vpop.eup %1932 }
 0x7d0   :  { %v1503_v8 = vadd.f32 1.0, %v1933_v23 }
 0x7d2   :  { %v1511_v45 = vmul.f32 0.5, %v1503_v8 }
 0x7d4   :  { %v1519_v6 = vmul.f32 %v1511_v45, %v1446_v32 }
 0x7d6   :  { %v1527_v47 = vpack.c.bf16 %v1519_v6, %v1518_v46 }
 0x7d8   :  { %1820 = vmatmul.msk.bf16.gmra.mxu3 %vm223_vm2, %v1527_v47 }
 0x82b   :  { %v1565_v50 = vpop.f32.mrf.mxu3 }
 0x82c   :  { %v1566_v51 = vadd.f32 %v1885_v49, %v1565_v50 }
 0x82e   :  { %1585 = vst.msk [vmem:[%s2360_s14] sm:$0xff] %vm81_vm1, %v1566_v51 }
 0x833   :  { %v1567_v52 = vpop.f32.mrf.mxu3 }
 0x834   :  { %v1568_v14 = vadd.f32 %v1885_v49, %v1567_v52 }
 0x836   :  { %1586 = vst.msk [vmem:[%s2360_s14 + $0x8] sm:$0xff] %vm81_vm1, %v1568_v14 }
 0x83b   :  { %v1570_v40 = vpop.f32.mrf.mxu3 }
 0x83c   :  { %v1571_v53 = vadd.f32 %v1885_v49, %v1570_v40 }
 0x83e   :  { %1587 = vst.msk [vmem:[%s2360_s14 + $0x10] sm:$0xff] %vm81_vm1, %v1571_v53 }
 0x843   :  { %v1572_v16 = vpop.f32.mrf.mxu3 }
 0x844   :  { %v1573_v54 = vadd.f32 %v1885_v49, %v1572_v16 }
 0x846   :  { %1588 = vst.msk [vmem:[%s2360_s14 + $0x18] sm:$0xff] %vm81_vm1, %v1573_v54 }
 0x84b   :  { %v1575_v48 = vpop.f32.mrf.mxu3 }
 0x84c   :  { %v1576_v55 = vadd.f32 %v1885_v49, %v1575_v48 }
 0x84e   :  { %1589 = vst.msk [vmem:[%s2360_s14 + $0x20] sm:$0xff] %vm81_vm1, %v1576_v55 }
 0x853   :  { %v1577_v56 = vpop.f32.mrf.mxu3 }
 0x854   :  { %v1578_v57 = vadd.f32 %v1885_v49, %v1577_v56 }
 0x856   :  { %1590 = vst.msk [vmem:[%s2360_s14 + $0x28] sm:$0xff] %vm81_vm1, %v1578_v57 }
 0x85b   :  { %v1580_v37 = vpop.f32.mrf.mxu3 }
 0x85c   :  { %v1581_v15 = vadd.f32 %v1885_v49, %v1580_v37 }
 0x85e   :  { %1591 = vst.msk [vmem:[%s2360_s14 + $0x30] sm:$0xff] %vm81_vm1, %v1581_v15 }
 0x863   :  { %v1582_v58 = vpop.f32.mrf.mxu3 }
 0x864   :  { %v1583_v59 = vadd.f32 %v1885_v49, %v1582_v58 }
 0x866   :  { %1592 = vst.msk [vmem:[%s2360_s14 + $0x38] sm:$0xff] %vm81_vm1, %v1583_v59 }
 0x867   :  { %1597 = vsyncpa [#allocation3], 1 }

</bundles_post_ra>
